<compile_context>
chip_gen: v7x
topology: tpu7x:2x2x1
jax: 0.10.0
libtpu: 0.0.40
codegen_flags: <defaults>
</compile_context>

<pallas_src>
import math

import jax
import jax.numpy as jnp
from jax.experimental import pallas as pl
from jax.experimental.pallas import tpu as pltpu  # noqa: F401  (TPU backend)

# ----- model hyperparameters (small, consistent with the module) -------------
X_DIM = 4
HIDDEN = 32
OUTPUT = 16
N_HEADS = 4
LAYERS = 2          # NOTE: the PyTorch module re-appends the SAME block, so
                    # all layers share one set of weights; we do the same.
SEQ = 8
BATCH = 2
HEAD_DIM = HIDDEN // N_HEADS
EPS = 1e-6


def _layer_norm_fast(x):
    # LayerNorm, elementwise_affine=False, eps=1e-6, one-pass variance:
    # var = E[x^2] - mu^2 -> the two reductions can overlap on the XLU.
    inv_n = 1.0 / x.shape[-1]
    mu = jnp.sum(x, axis=-1, keepdims=True) * inv_n
    ex2 = jnp.sum(x * x, axis=-1, keepdims=True) * inv_n
    var = ex2 - mu * mu
    return (x - mu) * jax.lax.rsqrt(var + EPS)


def _layer_norm_ref(x):
    # Canonical two-pass form, used only by the pure-JAX reference.
    mu = jnp.mean(x, axis=-1, keepdims=True)
    xc = x - mu
    var = jnp.mean(xc * xc, axis=-1, keepdims=True)
    return xc * jax.lax.rsqrt(var + EPS)


def _gelu_tanh(x):
    # GELU(approximate='tanh')
    c = math.sqrt(2.0 / math.pi)
    return 0.5 * x * (1.0 + jnp.tanh(c * (x + 0.044715 * x * x * x)))


def make_traj_kernel(B, T):
    BT = B * T
    scale = 1.0 / math.sqrt(HEAD_DIM)

    def traj_kernel(x_ref, posb_ref, w1_ref, wqkv_ref, wo_ref,
                    wf1_ref, wf2_ref, wh_ref, bias1_ref, bias2_ref, out_ref):
        # ---- one-time loads, bias unpacking, broadcasts (hoisted) ----------
        wqkv = wqkv_ref[...]                                   # (H, 3H)
        wo = wo_ref[...]                                       # (H, H)
        wf1 = wf1_ref[...]                                     # (H, 2H)
        wf2 = wf2_ref[...]                                     # (2H, H)

        s1 = bias1_ref[...]                                    # (1, 128)
        s2 = bias2_ref[...]                                    # (1, 128)
        bqkv = jnp.broadcast_to(s1[:, 0:3 * HIDDEN], (BT, 3 * HIDDEN))
        bo = jnp.broadcast_to(s1[:, 3 * HIDDEN:4 * HIDDEN], (BT, HIDDEN))
        bf1 = jnp.broadcast_to(s2[:, 0:2 * HIDDEN], (BT, 2 * HIDDEN))
        bf2 = jnp.broadcast_to(s2[:, 2 * HIDDEN:3 * HIDDEN], (BT, HIDDEN))
        bh = s2[:, 3 * HIDDEN:3 * HIDDEN + 2 * OUTPUT]         # (1, 2*OUT)

        # Cross-batch block mask: 0 inside a batch element's TxT block,
        # -1e30 elsewhere.  Built once (iota + compares only, no int divide)
        # and reused by every head in every layer.
        rb = jax.lax.broadcasted_iota(jnp.int32, (BT, BT), 0)
        cb = jax.lax.broadcasted_iota(jnp.int32, (BT, BT), 1)
        same = None
        for b in range(B):
            in_r = (rb >= b * T) & (rb < (b + 1) * T)
            in_c = (cb >= b * T) & (cb < (b + 1) * T)
            term = in_r & in_c
            same = term if same is None else (same | term)
        mask = jnp.where(same, jnp.float32(0.0), jnp.float32(-1e30))

        # ---- mlp1 + (pos_emb + b1) + norm1 on all B*T tokens at once -------
        h = jnp.dot(x_ref[...], w1_ref[...],
                    preferred_element_type=jnp.float32) + posb_ref[...]
        h = _layer_norm_fast(h)                                # (BT, H)

        for _ in range(LAYERS):
            # ---- multi-head self-attention, batched across B --------------
            qkv = jnp.dot(h, wqkv,
                          preferred_element_type=jnp.float32) + bqkv  # (BT,3H)
            head_outs = []
            for i in range(N_HEADS):
                q = qkv[:, i * HEAD_DIM:(i + 1) * HEAD_DIM] * scale
                k = qkv[:, HIDDEN + i * HEAD_DIM:
                        HIDDEN + (i + 1) * HEAD_DIM]
                v = qkv[:, 2 * HIDDEN + i * HEAD_DIM:
                        2 * HIDDEN + (i + 1) * HEAD_DIM]
                # q @ k^T without materializing a transpose.
                s = jax.lax.dot_general(
                    q, k, (((1,), (1,)), ((), ())),
                    preferred_element_type=jnp.float32) + mask        # (BT,BT)
                s = s - jnp.max(s, axis=-1, keepdims=True)
                p = jnp.exp(s)
                p = p * pl.reciprocal(jnp.sum(p, axis=-1, keepdims=True),
                                      approx=True)
                head_outs.append(
                    jnp.dot(p, v, preferred_element_type=jnp.float32))  # (BT,hd)
            attn = jnp.concatenate(head_outs, axis=-1)                  # (BT, H)
            h = h + jnp.dot(attn, wo,
                            preferred_element_type=jnp.float32) + bo

            # ---- FFN on LayerNorm(h), residual (all tokens at once) -------
            hn = _layer_norm_fast(h)
            f = jnp.dot(hn, wf1, preferred_element_type=jnp.float32) + bf1
            f = _gelu_tanh(f)
            h = h + jnp.dot(f, wf2, preferred_element_type=jnp.float32) + bf2

        # ---- last token of each batch element -> fused mean/log_var head ---
        last = jnp.concatenate(
            [h[b * T + T - 1: b * T + T, :] for b in range(B)], axis=0)  # (B,H)
        out_ref[...] = (jnp.dot(last, wh_ref[...],
                                preferred_element_type=jnp.float32) + bh)

    return traj_kernel


def sinusoidal_pos_emb(t, dim):
    half = dim // 2
    emb = math.log(10000.0) / (half - 1)
    freqs = jnp.exp(jnp.arange(half, dtype=jnp.float32) * -emb)
    args = jnp.arange(t, dtype=jnp.float32)[:, None] * freqs[None, :]
    return jnp.concatenate([jnp.sin(args), jnp.cos(args)], axis=-1)   # (T, dim)


def init_params(key):
    def lin(k, fan_in, fan_out):
        kw, kb = jax.random.split(k)
        lim = 1.0 / math.sqrt(fan_in)
        w = jax.random.uniform(kw, (fan_in, fan_out), jnp.float32, -lim, lim)
        b = jax.random.uniform(kb, (1, fan_out), jnp.float32, -lim, lim)
        return w, b

    ks = jax.random.split(key, 9)
    p = {}
    p["w1"], p["b1"] = lin(ks[0], X_DIM, HIDDEN)
    p["wq"], p["bq"] = lin(ks[1], HIDDEN, HIDDEN)
    p["wk"], p["bk"] = lin(ks[2], HIDDEN, HIDDEN)
    p["wv"], p["bv"] = lin(ks[3], HIDDEN, HIDDEN)
    p["wo"], p["bo"] = lin(ks[4], HIDDEN, HIDDEN)
    p["wf1"], p["bf1"] = lin(ks[5], HIDDEN, 2 * HIDDEN)
    p["wf2"], p["bf2"] = lin(ks[6], 2 * HIDDEN, HIDDEN)
    p["wm"], p["bm"] = lin(ks[7], HIDDEN, OUTPUT)
    p["wlv"], p["blv"] = lin(ks[8], HIDDEN, OUTPUT)
    return p


def trajectory_embedding(x, params):
    B, T, _ = x.shape

    # ---- wrapper-side layout prep (cheap XLA ops, once per call) -----------
    pos = sinusoidal_pos_emb(T, HIDDEN)                        # (T, H)
    pos_b1 = jnp.tile(pos, (B, 1)) + params["b1"]              # fold b1 into pos
    x_flat = x.reshape(B * T, X_DIM)

    # Fused lane-dense weights.
    wqkv = jnp.concatenate([params["wq"], params["wk"], params["wv"]],
                           axis=1)                             # (H, 3H)
    wh = jnp.concatenate([params["wm"], params["wlv"]], axis=1)  # (H, 2*OUT)

    # Bias slabs: two lane-dense (1, 128) operands instead of many tiny ones.
    bqkv = jnp.concatenate([params["bq"], params["bk"], params["bv"]],
                           axis=1)                             # (1, 3H)
    bh = jnp.concatenate([params["bm"], params["blv"]], axis=1)  # (1, 2*OUT)
    slab1 = jnp.concatenate([bqkv, params["bo"]], axis=1)        # (1, 128)
    slab2 = jnp.concatenate([params["bf1"], params["bf2"], bh],
                            axis=1)                              # (1, 128)
    assert slab1.shape == (1, 4 * HIDDEN)
    assert slab2.shape == (1, 3 * HIDDEN + 2 * OUTPUT)

    out = pl.pallas_call(
        make_traj_kernel(B, T),
        out_shape=jax.ShapeDtypeStruct((B, 2 * OUTPUT), jnp.float32),
    )(x_flat, pos_b1, params["w1"], wqkv, params["wo"],
      params["wf1"], params["wf2"], wh, slab1, slab2)

    return out[:, :OUTPUT], out[:, OUTPUT:]


# --------------------- pure-JAX reference (for checking) ---------------------
def reference(x, p):
    B, T, _ = x.shape
    pos = sinusoidal_pos_emb(T, HIDDEN)
    h = x @ p["w1"] + p["b1"] + pos
    h = _layer_norm_ref(h)
    for _ in range(LAYERS):
        q = h @ p["wq"] + p["bq"]
        k = h @ p["wk"] + p["bk"]
        v = h @ p["wv"] + p["bv"]
        qh = q.reshape(B, T, N_HEADS, HEAD_DIM).transpose(0, 2, 1, 3) / math.sqrt(HEAD_DIM)
        kh = k.reshape(B, T, N_HEADS, HEAD_DIM).transpose(0, 2, 1, 3)
        vh = v.reshape(B, T, N_HEADS, HEAD_DIM).transpose(0, 2, 1, 3)
        s = jnp.einsum("bhqd,bhkd->bhqk", qh, kh)
        a = jax.nn.softmax(s, axis=-1)
        o = jnp.einsum("bhqk,bhkd->bhqd", a, vh).transpose(0, 2, 1, 3).reshape(B, T, HIDDEN)
        h = h + (o @ p["wo"] + p["bo"])
        hn = _layer_norm_ref(h)
        f = hn @ p["wf1"] + p["bf1"]
        f = _gelu_tanh(f)
        f = f @ p["wf2"] + p["bf2"]
        h = h + f
    last = h[:, -1, :]
    return last @ p["wm"] + p["bm"], last @ p["wlv"] + p["blv"]


if __name__ == "__main__":
    key = jax.random.PRNGKey(0)
    kx, kp = jax.random.split(key)
    x = jax.random.normal(kx, (BATCH, SEQ, X_DIM), jnp.float32)
    params = init_params(kp)

    mean, log_var = trajectory_embedding(x, params)
    mean = jax.block_until_ready(mean)
    log_var = jax.block_until_ready(log_var)

    mean_ref, log_var_ref = reference(x, params)
    assert mean.shape == (BATCH, OUTPUT) and log_var.shape == (BATCH, OUTPUT)
    assert jnp.allclose(mean, mean_ref, atol=2e-2, rtol=2e-2)
    assert jnp.allclose(log_var, log_var_ref, atol=2e-2, rtol=2e-2)

    print("KERNEL_OK")
</pallas_src>

<mosaic_0001>
module attributes {stable_mosaic.version = 11 : i64} {
  func.func @traj_kernel(%arg0: memref<16x4xf32, #tpu.memory_space<vmem>>, %arg1: memref<16x32xf32, #tpu.memory_space<vmem>>, %arg2: memref<4x32xf32, #tpu.memory_space<vmem>>, %arg3: memref<32x96xf32, #tpu.memory_space<vmem>>, %arg4: memref<32x32xf32, #tpu.memory_space<vmem>>, %arg5: memref<32x64xf32, #tpu.memory_space<vmem>>, %arg6: memref<64x32xf32, #tpu.memory_space<vmem>>, %arg7: memref<32x32xf32, #tpu.memory_space<vmem>>, %arg8: memref<1x128xf32, #tpu.memory_space<vmem>>, %arg9: memref<1x128xf32, #tpu.memory_space<vmem>>, %arg10: memref<2x32xf32, #tpu.memory_space<vmem>>) attributes {dimension_semantics = [], scalar_prefetch = 0 : i64, scratch_operands = 0 : i64, tpu.core_type = #tpu.core_type<tc>} {
    %c0 = arith.constant 0 : index
    %c0_0 = arith.constant 0 : index
    %0 = vector.load %arg3[%c0, %c0_0] : memref<32x96xf32, #tpu.memory_space<vmem>>, vector<32x96xf32>
    %c0_1 = arith.constant 0 : index
    %c0_2 = arith.constant 0 : index
    %1 = vector.load %arg4[%c0_1, %c0_2] : memref<32x32xf32, #tpu.memory_space<vmem>>, vector<32x32xf32>
    %c0_3 = arith.constant 0 : index
    %c0_4 = arith.constant 0 : index
    %2 = vector.load %arg5[%c0_3, %c0_4] : memref<32x64xf32, #tpu.memory_space<vmem>>, vector<32x64xf32>
    %c0_5 = arith.constant 0 : index
    %c0_6 = arith.constant 0 : index
    %3 = vector.load %arg6[%c0_5, %c0_6] : memref<64x32xf32, #tpu.memory_space<vmem>>, vector<64x32xf32>
    %c0_7 = arith.constant 0 : index
    %c0_8 = arith.constant 0 : index
    %4 = vector.load %arg8[%c0_7, %c0_8] : memref<1x128xf32, #tpu.memory_space<vmem>>, vector<1x128xf32>
    %c0_9 = arith.constant 0 : index
    %c0_10 = arith.constant 0 : index
    %5 = vector.load %arg9[%c0_9, %c0_10] : memref<1x128xf32, #tpu.memory_space<vmem>>, vector<1x128xf32>
    %6 = vector.extract_strided_slice %4 {offsets = [0, 0], sizes = [1, 96], strides = [1, 1]} : vector<1x128xf32> to vector<1x96xf32>
    %7 = vector.shape_cast %6 : vector<1x96xf32> to vector<1x96xf32>
    %8 = vector.broadcast %7 : vector<1x96xf32> to vector<16x96xf32>
    %9 = vector.extract_strided_slice %4 {offsets = [0, 96], sizes = [1, 32], strides = [1, 1]} : vector<1x128xf32> to vector<1x32xf32>
    %10 = vector.shape_cast %9 : vector<1x32xf32> to vector<1x32xf32>
    %11 = vector.broadcast %10 : vector<1x32xf32> to vector<16x32xf32>
    %12 = vector.extract_strided_slice %5 {offsets = [0, 0], sizes = [1, 64], strides = [1, 1]} : vector<1x128xf32> to vector<1x64xf32>
    %13 = vector.shape_cast %12 : vector<1x64xf32> to vector<1x64xf32>
    %14 = vector.broadcast %13 : vector<1x64xf32> to vector<16x64xf32>
    %15 = vector.extract_strided_slice %5 {offsets = [0, 64], sizes = [1, 32], strides = [1, 1]} : vector<1x128xf32> to vector<1x32xf32>
    %16 = vector.shape_cast %15 : vector<1x32xf32> to vector<1x32xf32>
    %17 = vector.broadcast %16 : vector<1x32xf32> to vector<16x32xf32>
    %18 = vector.extract_strided_slice %5 {offsets = [0, 96], sizes = [1, 32], strides = [1, 1]} : vector<1x128xf32> to vector<1x32xf32>
    %19 = tpu.iota {dimensions = array<i32: 0>} : vector<16x16xi32>
    %20 = tpu.iota {dimensions = array<i32: 1>} : vector<16x16xi32>
    %c0_i32 = arith.constant 0 : i32
    %21 = vector.broadcast %c0_i32 : i32 to vector<16x16xi32>
    %22 = arith.cmpi sge, %19, %21 : vector<16x16xi32>
    %c8_i32 = arith.constant 8 : i32
    %23 = vector.broadcast %c8_i32 : i32 to vector<16x16xi32>
    %24 = arith.cmpi slt, %19, %23 : vector<16x16xi32>
    %25 = arith.andi %22, %24 : vector<16x16xi1>
    %c0_i32_11 = arith.constant 0 : i32
    %26 = vector.broadcast %c0_i32_11 : i32 to vector<16x16xi32>
    %27 = arith.cmpi sge, %20, %26 : vector<16x16xi32>
    %c8_i32_12 = arith.constant 8 : i32
    %28 = vector.broadcast %c8_i32_12 : i32 to vector<16x16xi32>
    %29 = arith.cmpi slt, %20, %28 : vector<16x16xi32>
    %30 = arith.andi %27, %29 : vector<16x16xi1>
    %31 = arith.andi %25, %30 : vector<16x16xi1>
    %c8_i32_13 = arith.constant 8 : i32
    %32 = vector.broadcast %c8_i32_13 : i32 to vector<16x16xi32>
    %33 = arith.cmpi sge, %19, %32 : vector<16x16xi32>
    %c16_i32 = arith.constant 16 : i32
    %34 = vector.broadcast %c16_i32 : i32 to vector<16x16xi32>
    %35 = arith.cmpi slt, %19, %34 : vector<16x16xi32>
    %36 = arith.andi %33, %35 : vector<16x16xi1>
    %c8_i32_14 = arith.constant 8 : i32
    %37 = vector.broadcast %c8_i32_14 : i32 to vector<16x16xi32>
    %38 = arith.cmpi sge, %20, %37 : vector<16x16xi32>
    %c16_i32_15 = arith.constant 16 : i32
    %39 = vector.broadcast %c16_i32_15 : i32 to vector<16x16xi32>
    %40 = arith.cmpi slt, %20, %39 : vector<16x16xi32>
    %41 = arith.andi %38, %40 : vector<16x16xi1>
    %42 = arith.andi %36, %41 : vector<16x16xi1>
    %43 = arith.ori %31, %42 : vector<16x16xi1>
    %cst = arith.constant 0.000000e+00 : f32
    %cst_16 = arith.constant -1.000000e+30 : f32
    %44 = vector.broadcast %cst : f32 to vector<16x16xf32>
    %45 = vector.broadcast %cst_16 : f32 to vector<16x16xf32>
    %46 = arith.select %43, %44, %45 : vector<16x16xi1>, vector<16x16xf32>
    %c0_17 = arith.constant 0 : index
    %c0_18 = arith.constant 0 : index
    %47 = vector.load %arg0[%c0_17, %c0_18] : memref<16x4xf32, #tpu.memory_space<vmem>>, vector<16x4xf32>
    %c0_19 = arith.constant 0 : index
    %c0_20 = arith.constant 0 : index
    %48 = vector.load %arg2[%c0_19, %c0_20] : memref<4x32xf32, #tpu.memory_space<vmem>>, vector<4x32xf32>
    %cst_21 = arith.constant dense<0.000000e+00> : vector<16x32xf32>
    %49 = tpu.matmul %47, %48, %cst_21 {dimension_numbers = #tpu.dot_dimension_numbers<[1], [0], [0], [1], [0, 0, 1, 1], [], []>} : vector<16x4xf32>, vector<4x32xf32>, vector<16x32xf32> -> vector<16x32xf32>
    %c0_22 = arith.constant 0 : index
    %c0_23 = arith.constant 0 : index
    %50 = vector.load %arg1[%c0_22, %c0_23] : memref<16x32xf32, #tpu.memory_space<vmem>>, vector<16x32xf32>
    %51 = arith.addf %49, %50 : vector<16x32xf32>
    %cst_24 = arith.constant dense<0.000000e+00> : vector<16xf32>
    %52 = vector.multi_reduction <add>, %51, %cst_24 [1] : vector<16x32xf32> to vector<16xf32>
    %53 = vector.shape_cast %52 : vector<16xf32> to vector<16x1xf32>
    %cst_25 = arith.constant 3.125000e-02 : f32
    %54 = vector.broadcast %cst_25 : f32 to vector<16x1xf32>
    %55 = arith.mulf %53, %54 : vector<16x1xf32>
    %56 = arith.mulf %51, %51 : vector<16x32xf32>
    %cst_26 = arith.constant dense<0.000000e+00> : vector<16xf32>
    %57 = vector.multi_reduction <add>, %56, %cst_26 [1] : vector<16x32xf32> to vector<16xf32>
    %58 = vector.shape_cast %57 : vector<16xf32> to vector<16x1xf32>
    %cst_27 = arith.constant 3.125000e-02 : f32
    %59 = vector.broadcast %cst_27 : f32 to vector<16x1xf32>
    %60 = arith.mulf %58, %59 : vector<16x1xf32>
    %61 = arith.mulf %55, %55 : vector<16x1xf32>
    %62 = arith.subf %60, %61 : vector<16x1xf32>
    %63 = vector.broadcast %55 : vector<16x1xf32> to vector<16x32xf32>
    %64 = arith.subf %51, %63 : vector<16x32xf32>
    %cst_28 = arith.constant 9.99999997E-7 : f32
    %65 = vector.broadcast %cst_28 : f32 to vector<16x1xf32>
    %66 = arith.addf %62, %65 : vector<16x1xf32>
    %67 = math.rsqrt %66 : vector<16x1xf32>
    %68 = vector.broadcast %67 : vector<16x1xf32> to vector<16x32xf32>
    %69 = arith.mulf %64, %68 : vector<16x32xf32>
    %cst_29 = arith.constant dense<0.000000e+00> : vector<16x96xf32>
    %70 = tpu.matmul %69, %0, %cst_29 {dimension_numbers = #tpu.dot_dimension_numbers<[1], [0], [0], [1], [0, 0, 1, 1], [], []>} : vector<16x32xf32>, vector<32x96xf32>, vector<16x96xf32> -> vector<16x96xf32>
    %71 = arith.addf %70, %8 : vector<16x96xf32>
    %72 = vector.extract_strided_slice %71 {offsets = [0, 0], sizes = [16, 8], strides = [1, 1]} : vector<16x96xf32> to vector<16x8xf32>
    %cst_30 = arith.constant 0.353553385 : f32
    %73 = vector.broadcast %cst_30 : f32 to vector<16x8xf32>
    %74 = arith.mulf %72, %73 : vector<16x8xf32>
    %75 = vector.extract_strided_slice %71 {offsets = [0, 32], sizes = [16, 8], strides = [1, 1]} : vector<16x96xf32> to vector<16x8xf32>
    %76 = vector.extract_strided_slice %71 {offsets = [0, 64], sizes = [16, 8], strides = [1, 1]} : vector<16x96xf32> to vector<16x8xf32>
    %cst_31 = arith.constant dense<0.000000e+00> : vector<16x16xf32>
    %77 = tpu.matmul %74, %75, %cst_31 {dimension_numbers = #tpu.dot_dimension_numbers<[1], [1], [0], [0], [0, 0, 1, 0], [], []>} : vector<16x8xf32>, vector<16x8xf32>, vector<16x16xf32> -> vector<16x16xf32>
    %78 = arith.addf %77, %46 : vector<16x16xf32>
    %cst_32 = arith.constant dense<0xFF800000> : vector<16xf32>
    %79 = vector.multi_reduction <maximumf>, %78, %cst_32 [1] : vector<16x16xf32> to vector<16xf32>
    %80 = vector.shape_cast %79 : vector<16xf32> to vector<16x1xf32>
    %81 = vector.broadcast %80 : vector<16x1xf32> to vector<16x16xf32>
    %82 = arith.subf %78, %81 : vector<16x16xf32>
    %83 = math.exp %82 : vector<16x16xf32>
    %cst_33 = arith.constant dense<0.000000e+00> : vector<16xf32>
    %84 = vector.multi_reduction <add>, %83, %cst_33 [1] : vector<16x16xf32> to vector<16xf32>
    %85 = vector.shape_cast %84 : vector<16xf32> to vector<16x1xf32>
    %86 = tpu.reciprocal %85 {approx = true} : vector<16x1xf32> -> vector<16x1xf32>
    %87 = vector.broadcast %86 : vector<16x1xf32> to vector<16x16xf32>
    %88 = arith.mulf %83, %87 : vector<16x16xf32>
    %cst_34 = arith.constant dense<0.000000e+00> : vector<16x8xf32>
    %89 = tpu.matmul %88, %76, %cst_34 {dimension_numbers = #tpu.dot_dimension_numbers<[1], [0], [0], [1], [0, 0, 1, 1], [], []>} : vector<16x16xf32>, vector<16x8xf32>, vector<16x8xf32> -> vector<16x8xf32>
    %90 = vector.extract_strided_slice %71 {offsets = [0, 8], sizes = [16, 8], strides = [1, 1]} : vector<16x96xf32> to vector<16x8xf32>
    %cst_35 = arith.constant 0.353553385 : f32
    %91 = vector.broadcast %cst_35 : f32 to vector<16x8xf32>
    %92 = arith.mulf %90, %91 : vector<16x8xf32>
    %93 = vector.extract_strided_slice %71 {offsets = [0, 40], sizes = [16, 8], strides = [1, 1]} : vector<16x96xf32> to vector<16x8xf32>
    %94 = vector.extract_strided_slice %71 {offsets = [0, 72], sizes = [16, 8], strides = [1, 1]} : vector<16x96xf32> to vector<16x8xf32>
    %cst_36 = arith.constant dense<0.000000e+00> : vector<16x16xf32>
    %95 = tpu.matmul %92, %93, %cst_36 {dimension_numbers = #tpu.dot_dimension_numbers<[1], [1], [0], [0], [0, 0, 1, 0], [], []>} : vector<16x8xf32>, vector<16x8xf32>, vector<16x16xf32> -> vector<16x16xf32>
    %96 = arith.addf %95, %46 : vector<16x16xf32>
    %cst_37 = arith.constant dense<0xFF800000> : vector<16xf32>
    %97 = vector.multi_reduction <maximumf>, %96, %cst_37 [1] : vector<16x16xf32> to vector<16xf32>
    %98 = vector.shape_cast %97 : vector<16xf32> to vector<16x1xf32>
    %99 = vector.broadcast %98 : vector<16x1xf32> to vector<16x16xf32>
    %100 = arith.subf %96, %99 : vector<16x16xf32>
    %101 = math.exp %100 : vector<16x16xf32>
    %cst_38 = arith.constant dense<0.000000e+00> : vector<16xf32>
    %102 = vector.multi_reduction <add>, %101, %cst_38 [1] : vector<16x16xf32> to vector<16xf32>
    %103 = vector.shape_cast %102 : vector<16xf32> to vector<16x1xf32>
    %104 = tpu.reciprocal %103 {approx = true} : vector<16x1xf32> -> vector<16x1xf32>
    %105 = vector.broadcast %104 : vector<16x1xf32> to vector<16x16xf32>
    %106 = arith.mulf %101, %105 : vector<16x16xf32>
    %cst_39 = arith.constant dense<0.000000e+00> : vector<16x8xf32>
    %107 = tpu.matmul %106, %94, %cst_39 {dimension_numbers = #tpu.dot_dimension_numbers<[1], [0], [0], [1], [0, 0, 1, 1], [], []>} : vector<16x16xf32>, vector<16x8xf32>, vector<16x8xf32> -> vector<16x8xf32>
    %108 = vector.extract_strided_slice %71 {offsets = [0, 16], sizes = [16, 8], strides = [1, 1]} : vector<16x96xf32> to vector<16x8xf32>
    %cst_40 = arith.constant 0.353553385 : f32
    %109 = vector.broadcast %cst_40 : f32 to vector<16x8xf32>
    %110 = arith.mulf %108, %109 : vector<16x8xf32>
    %111 = vector.extract_strided_slice %71 {offsets = [0, 48], sizes = [16, 8], strides = [1, 1]} : vector<16x96xf32> to vector<16x8xf32>
    %112 = vector.extract_strided_slice %71 {offsets = [0, 80], sizes = [16, 8], strides = [1, 1]} : vector<16x96xf32> to vector<16x8xf32>
    %cst_41 = arith.constant dense<0.000000e+00> : vector<16x16xf32>
    %113 = tpu.matmul %110, %111, %cst_41 {dimension_numbers = #tpu.dot_dimension_numbers<[1], [1], [0], [0], [0, 0, 1, 0], [], []>} : vector<16x8xf32>, vector<16x8xf32>, vector<16x16xf32> -> vector<16x16xf32>
    %114 = arith.addf %113, %46 : vector<16x16xf32>
    %cst_42 = arith.constant dense<0xFF800000> : vector<16xf32>
    %115 = vector.multi_reduction <maximumf>, %114, %cst_42 [1] : vector<16x16xf32> to vector<16xf32>
    %116 = vector.shape_cast %115 : vector<16xf32> to vector<16x1xf32>
    %117 = vector.broadcast %116 : vector<16x1xf32> to vector<16x16xf32>
    %118 = arith.subf %114, %117 : vector<16x16xf32>
    %119 = math.exp %118 : vector<16x16xf32>
    %cst_43 = arith.constant dense<0.000000e+00> : vector<16xf32>
    %120 = vector.multi_reduction <add>, %119, %cst_43 [1] : vector<16x16xf32> to vector<16xf32>
    %121 = vector.shape_cast %120 : vector<16xf32> to vector<16x1xf32>
    %122 = tpu.reciprocal %121 {approx = true} : vector<16x1xf32> -> vector<16x1xf32>
    %123 = vector.broadcast %122 : vector<16x1xf32> to vector<16x16xf32>
    %124 = arith.mulf %119, %123 : vector<16x16xf32>
    %cst_44 = arith.constant dense<0.000000e+00> : vector<16x8xf32>
    %125 = tpu.matmul %124, %112, %cst_44 {dimension_numbers = #tpu.dot_dimension_numbers<[1], [0], [0], [1], [0, 0, 1, 1], [], []>} : vector<16x16xf32>, vector<16x8xf32>, vector<16x8xf32> -> vector<16x8xf32>
    %126 = vector.extract_strided_slice %71 {offsets = [0, 24], sizes = [16, 8], strides = [1, 1]} : vector<16x96xf32> to vector<16x8xf32>
    %cst_45 = arith.constant 0.353553385 : f32
    %127 = vector.broadcast %cst_45 : f32 to vector<16x8xf32>
    %128 = arith.mulf %126, %127 : vector<16x8xf32>
    %129 = vector.extract_strided_slice %71 {offsets = [0, 56], sizes = [16, 8], strides = [1, 1]} : vector<16x96xf32> to vector<16x8xf32>
    %130 = vector.extract_strided_slice %71 {offsets = [0, 88], sizes = [16, 8], strides = [1, 1]} : vector<16x96xf32> to vector<16x8xf32>
    %cst_46 = arith.constant dense<0.000000e+00> : vector<16x16xf32>
    %131 = tpu.matmul %128, %129, %cst_46 {dimension_numbers = #tpu.dot_dimension_numbers<[1], [1], [0], [0], [0, 0, 1, 0], [], []>} : vector<16x8xf32>, vector<16x8xf32>, vector<16x16xf32> -> vector<16x16xf32>
    %132 = arith.addf %131, %46 : vector<16x16xf32>
    %cst_47 = arith.constant dense<0xFF800000> : vector<16xf32>
    %133 = vector.multi_reduction <maximumf>, %132, %cst_47 [1] : vector<16x16xf32> to vector<16xf32>
    %134 = vector.shape_cast %133 : vector<16xf32> to vector<16x1xf32>
    %135 = vector.broadcast %134 : vector<16x1xf32> to vector<16x16xf32>
    %136 = arith.subf %132, %135 : vector<16x16xf32>
    %137 = math.exp %136 : vector<16x16xf32>
    %cst_48 = arith.constant dense<0.000000e+00> : vector<16xf32>
    %138 = vector.multi_reduction <add>, %137, %cst_48 [1] : vector<16x16xf32> to vector<16xf32>
    %139 = vector.shape_cast %138 : vector<16xf32> to vector<16x1xf32>
    %140 = tpu.reciprocal %139 {approx = true} : vector<16x1xf32> -> vector<16x1xf32>
    %141 = vector.broadcast %140 : vector<16x1xf32> to vector<16x16xf32>
    %142 = arith.mulf %137, %141 : vector<16x16xf32>
    %cst_49 = arith.constant dense<0.000000e+00> : vector<16x8xf32>
    %143 = tpu.matmul %142, %130, %cst_49 {dimension_numbers = #tpu.dot_dimension_numbers<[1], [0], [0], [1], [0, 0, 1, 1], [], []>} : vector<16x16xf32>, vector<16x8xf32>, vector<16x8xf32> -> vector<16x8xf32>
    %144 = tpu.concatenate %89, %107, %125, %143 in 1 : vector<16x8xf32>, vector<16x8xf32>, vector<16x8xf32>, vector<16x8xf32> -> vector<16x32xf32>
    %cst_50 = arith.constant dense<0.000000e+00> : vector<16x32xf32>
    %145 = tpu.matmul %144, %1, %cst_50 {dimension_numbers = #tpu.dot_dimension_numbers<[1], [0], [0], [1], [0, 0, 1, 1], [], []>} : vector<16x32xf32>, vector<32x32xf32>, vector<16x32xf32> -> vector<16x32xf32>
    %146 = arith.addf %69, %145 : vector<16x32xf32>
    %147 = arith.addf %146, %11 : vector<16x32xf32>
    %cst_51 = arith.constant dense<0.000000e+00> : vector<16xf32>
    %148 = vector.multi_reduction <add>, %147, %cst_51 [1] : vector<16x32xf32> to vector<16xf32>
    %149 = vector.shape_cast %148 : vector<16xf32> to vector<16x1xf32>
    %cst_52 = arith.constant 3.125000e-02 : f32
    %150 = vector.broadcast %cst_52 : f32 to vector<16x1xf32>
    %151 = arith.mulf %149, %150 : vector<16x1xf32>
    %152 = arith.mulf %147, %147 : vector<16x32xf32>
    %cst_53 = arith.constant dense<0.000000e+00> : vector<16xf32>
    %153 = vector.multi_reduction <add>, %152, %cst_53 [1] : vector<16x32xf32> to vector<16xf32>
    %154 = vector.shape_cast %153 : vector<16xf32> to vector<16x1xf32>
    %cst_54 = arith.constant 3.125000e-02 : f32
    %155 = vector.broadcast %cst_54 : f32 to vector<16x1xf32>
    %156 = arith.mulf %154, %155 : vector<16x1xf32>
    %157 = arith.mulf %151, %151 : vector<16x1xf32>
    %158 = arith.subf %156, %157 : vector<16x1xf32>
    %159 = vector.broadcast %151 : vector<16x1xf32> to vector<16x32xf32>
    %160 = arith.subf %147, %159 : vector<16x32xf32>
    %cst_55 = arith.constant 9.99999997E-7 : f32
    %161 = vector.broadcast %cst_55 : f32 to vector<16x1xf32>
    %162 = arith.addf %158, %161 : vector<16x1xf32>
    %163 = math.rsqrt %162 : vector<16x1xf32>
    %164 = vector.broadcast %163 : vector<16x1xf32> to vector<16x32xf32>
    %165 = arith.mulf %160, %164 : vector<16x32xf32>
    %cst_56 = arith.constant dense<0.000000e+00> : vector<16x64xf32>
    %166 = tpu.matmul %165, %2, %cst_56 {dimension_numbers = #tpu.dot_dimension_numbers<[1], [0], [0], [1], [0, 0, 1, 1], [], []>} : vector<16x32xf32>, vector<32x64xf32>, vector<16x64xf32> -> vector<16x64xf32>
    %167 = arith.addf %166, %14 : vector<16x64xf32>
    %cst_57 = arith.constant 5.000000e-01 : f32
    %168 = vector.broadcast %cst_57 : f32 to vector<16x64xf32>
    %169 = arith.mulf %168, %167 : vector<16x64xf32>
    %cst_58 = arith.constant 4.471500e-02 : f32
    %170 = vector.broadcast %cst_58 : f32 to vector<16x64xf32>
    %171 = arith.mulf %170, %167 : vector<16x64xf32>
    %172 = arith.mulf %171, %167 : vector<16x64xf32>
    %173 = arith.mulf %172, %167 : vector<16x64xf32>
    %174 = arith.addf %167, %173 : vector<16x64xf32>
    %cst_59 = arith.constant 0.797884583 : f32
    %175 = vector.broadcast %cst_59 : f32 to vector<16x64xf32>
    %176 = arith.mulf %175, %174 : vector<16x64xf32>
    %177 = math.tanh %176 : vector<16x64xf32>
    %cst_60 = arith.constant 1.000000e+00 : f32
    %178 = vector.broadcast %cst_60 : f32 to vector<16x64xf32>
    %179 = arith.addf %178, %177 : vector<16x64xf32>
    %180 = arith.mulf %169, %179 : vector<16x64xf32>
    %cst_61 = arith.constant dense<0.000000e+00> : vector<16x32xf32>
    %181 = tpu.matmul %180, %3, %cst_61 {dimension_numbers = #tpu.dot_dimension_numbers<[1], [0], [0], [1], [0, 0, 1, 1], [], []>} : vector<16x64xf32>, vector<64x32xf32>, vector<16x32xf32> -> vector<16x32xf32>
    %182 = arith.addf %147, %181 : vector<16x32xf32>
    %183 = arith.addf %182, %17 : vector<16x32xf32>
    %cst_62 = arith.constant dense<0.000000e+00> : vector<16x96xf32>
    %184 = tpu.matmul %183, %0, %cst_62 {dimension_numbers = #tpu.dot_dimension_numbers<[1], [0], [0], [1], [0, 0, 1, 1], [], []>} : vector<16x32xf32>, vector<32x96xf32>, vector<16x96xf32> -> vector<16x96xf32>
    %185 = arith.addf %184, %8 : vector<16x96xf32>
    %186 = vector.extract_strided_slice %185 {offsets = [0, 0], sizes = [16, 8], strides = [1, 1]} : vector<16x96xf32> to vector<16x8xf32>
    %cst_63 = arith.constant 0.353553385 : f32
    %187 = vector.broadcast %cst_63 : f32 to vector<16x8xf32>
    %188 = arith.mulf %186, %187 : vector<16x8xf32>
    %189 = vector.extract_strided_slice %185 {offsets = [0, 32], sizes = [16, 8], strides = [1, 1]} : vector<16x96xf32> to vector<16x8xf32>
    %190 = vector.extract_strided_slice %185 {offsets = [0, 64], sizes = [16, 8], strides = [1, 1]} : vector<16x96xf32> to vector<16x8xf32>
    %cst_64 = arith.constant dense<0.000000e+00> : vector<16x16xf32>
    %191 = tpu.matmul %188, %189, %cst_64 {dimension_numbers = #tpu.dot_dimension_numbers<[1], [1], [0], [0], [0, 0, 1, 0], [], []>} : vector<16x8xf32>, vector<16x8xf32>, vector<16x16xf32> -> vector<16x16xf32>
    %192 = arith.addf %191, %46 : vector<16x16xf32>
    %cst_65 = arith.constant dense<0xFF800000> : vector<16xf32>
    %193 = vector.multi_reduction <maximumf>, %192, %cst_65 [1] : vector<16x16xf32> to vector<16xf32>
    %194 = vector.shape_cast %193 : vector<16xf32> to vector<16x1xf32>
    %195 = vector.broadcast %194 : vector<16x1xf32> to vector<16x16xf32>
    %196 = arith.subf %192, %195 : vector<16x16xf32>
    %197 = math.exp %196 : vector<16x16xf32>
    %cst_66 = arith.constant dense<0.000000e+00> : vector<16xf32>
    %198 = vector.multi_reduction <add>, %197, %cst_66 [1] : vector<16x16xf32> to vector<16xf32>
    %199 = vector.shape_cast %198 : vector<16xf32> to vector<16x1xf32>
    %200 = tpu.reciprocal %199 {approx = true} : vector<16x1xf32> -> vector<16x1xf32>
    %201 = vector.broadcast %200 : vector<16x1xf32> to vector<16x16xf32>
    %202 = arith.mulf %197, %201 : vector<16x16xf32>
    %cst_67 = arith.constant dense<0.000000e+00> : vector<16x8xf32>
    %203 = tpu.matmul %202, %190, %cst_67 {dimension_numbers = #tpu.dot_dimension_numbers<[1], [0], [0], [1], [0, 0, 1, 1], [], []>} : vector<16x16xf32>, vector<16x8xf32>, vector<16x8xf32> -> vector<16x8xf32>
    %204 = vector.extract_strided_slice %185 {offsets = [0, 8], sizes = [16, 8], strides = [1, 1]} : vector<16x96xf32> to vector<16x8xf32>
    %cst_68 = arith.constant 0.353553385 : f32
    %205 = vector.broadcast %cst_68 : f32 to vector<16x8xf32>
    %206 = arith.mulf %204, %205 : vector<16x8xf32>
    %207 = vector.extract_strided_slice %185 {offsets = [0, 40], sizes = [16, 8], strides = [1, 1]} : vector<16x96xf32> to vector<16x8xf32>
    %208 = vector.extract_strided_slice %185 {offsets = [0, 72], sizes = [16, 8], strides = [1, 1]} : vector<16x96xf32> to vector<16x8xf32>
    %cst_69 = arith.constant dense<0.000000e+00> : vector<16x16xf32>
    %209 = tpu.matmul %206, %207, %cst_69 {dimension_numbers = #tpu.dot_dimension_numbers<[1], [1], [0], [0], [0, 0, 1, 0], [], []>} : vector<16x8xf32>, vector<16x8xf32>, vector<16x16xf32> -> vector<16x16xf32>
    %210 = arith.addf %209, %46 : vector<16x16xf32>
    %cst_70 = arith.constant dense<0xFF800000> : vector<16xf32>
    %211 = vector.multi_reduction <maximumf>, %210, %cst_70 [1] : vector<16x16xf32> to vector<16xf32>
    %212 = vector.shape_cast %211 : vector<16xf32> to vector<16x1xf32>
    %213 = vector.broadcast %212 : vector<16x1xf32> to vector<16x16xf32>
    %214 = arith.subf %210, %213 : vector<16x16xf32>
    %215 = math.exp %214 : vector<16x16xf32>
    %cst_71 = arith.constant dense<0.000000e+00> : vector<16xf32>
    %216 = vector.multi_reduction <add>, %215, %cst_71 [1] : vector<16x16xf32> to vector<16xf32>
    %217 = vector.shape_cast %216 : vector<16xf32> to vector<16x1xf32>
    %218 = tpu.reciprocal %217 {approx = true} : vector<16x1xf32> -> vector<16x1xf32>
    %219 = vector.broadcast %218 : vector<16x1xf32> to vector<16x16xf32>
    %220 = arith.mulf %215, %219 : vector<16x16xf32>
    %cst_72 = arith.constant dense<0.000000e+00> : vector<16x8xf32>
    %221 = tpu.matmul %220, %208, %cst_72 {dimension_numbers = #tpu.dot_dimension_numbers<[1], [0], [0], [1], [0, 0, 1, 1], [], []>} : vector<16x16xf32>, vector<16x8xf32>, vector<16x8xf32> -> vector<16x8xf32>
    %222 = vector.extract_strided_slice %185 {offsets = [0, 16], sizes = [16, 8], strides = [1, 1]} : vector<16x96xf32> to vector<16x8xf32>
    %cst_73 = arith.constant 0.353553385 : f32
    %223 = vector.broadcast %cst_73 : f32 to vector<16x8xf32>
    %224 = arith.mulf %222, %223 : vector<16x8xf32>
    %225 = vector.extract_strided_slice %185 {offsets = [0, 48], sizes = [16, 8], strides = [1, 1]} : vector<16x96xf32> to vector<16x8xf32>
    %226 = vector.extract_strided_slice %185 {offsets = [0, 80], sizes = [16, 8], strides = [1, 1]} : vector<16x96xf32> to vector<16x8xf32>
    %cst_74 = arith.constant dense<0.000000e+00> : vector<16x16xf32>
    %227 = tpu.matmul %224, %225, %cst_74 {dimension_numbers = #tpu.dot_dimension_numbers<[1], [1], [0], [0], [0, 0, 1, 0], [], []>} : vector<16x8xf32>, vector<16x8xf32>, vector<16x16xf32> -> vector<16x16xf32>
    %228 = arith.addf %227, %46 : vector<16x16xf32>
    %cst_75 = arith.constant dense<0xFF800000> : vector<16xf32>
    %229 = vector.multi_reduction <maximumf>, %228, %cst_75 [1] : vector<16x16xf32> to vector<16xf32>
    %230 = vector.shape_cast %229 : vector<16xf32> to vector<16x1xf32>
    %231 = vector.broadcast %230 : vector<16x1xf32> to vector<16x16xf32>
    %232 = arith.subf %228, %231 : vector<16x16xf32>
    %233 = math.exp %232 : vector<16x16xf32>
    %cst_76 = arith.constant dense<0.000000e+00> : vector<16xf32>
    %234 = vector.multi_reduction <add>, %233, %cst_76 [1] : vector<16x16xf32> to vector<16xf32>
    %235 = vector.shape_cast %234 : vector<16xf32> to vector<16x1xf32>
    %236 = tpu.reciprocal %235 {approx = true} : vector<16x1xf32> -> vector<16x1xf32>
    %237 = vector.broadcast %236 : vector<16x1xf32> to vector<16x16xf32>
    %238 = arith.mulf %233, %237 : vector<16x16xf32>
    %cst_77 = arith.constant dense<0.000000e+00> : vector<16x8xf32>
    %239 = tpu.matmul %238, %226, %cst_77 {dimension_numbers = #tpu.dot_dimension_numbers<[1], [0], [0], [1], [0, 0, 1, 1], [], []>} : vector<16x16xf32>, vector<16x8xf32>, vector<16x8xf32> -> vector<16x8xf32>
    %240 = vector.extract_strided_slice %185 {offsets = [0, 24], sizes = [16, 8], strides = [1, 1]} : vector<16x96xf32> to vector<16x8xf32>
    %cst_78 = arith.constant 0.353553385 : f32
    %241 = vector.broadcast %cst_78 : f32 to vector<16x8xf32>
    %242 = arith.mulf %240, %241 : vector<16x8xf32>
    %243 = vector.extract_strided_slice %185 {offsets = [0, 56], sizes = [16, 8], strides = [1, 1]} : vector<16x96xf32> to vector<16x8xf32>
    %244 = vector.extract_strided_slice %185 {offsets = [0, 88], sizes = [16, 8], strides = [1, 1]} : vector<16x96xf32> to vector<16x8xf32>
    %cst_79 = arith.constant dense<0.000000e+00> : vector<16x16xf32>
    %245 = tpu.matmul %242, %243, %cst_79 {dimension_numbers = #tpu.dot_dimension_numbers<[1], [1], [0], [0], [0, 0, 1, 0], [], []>} : vector<16x8xf32>, vector<16x8xf32>, vector<16x16xf32> -> vector<16x16xf32>
    %246 = arith.addf %245, %46 : vector<16x16xf32>
    %cst_80 = arith.constant dense<0xFF800000> : vector<16xf32>
    %247 = vector.multi_reduction <maximumf>, %246, %cst_80 [1] : vector<16x16xf32> to vector<16xf32>
    %248 = vector.shape_cast %247 : vector<16xf32> to vector<16x1xf32>
    %249 = vector.broadcast %248 : vector<16x1xf32> to vector<16x16xf32>
    %250 = arith.subf %246, %249 : vector<16x16xf32>
    %251 = math.exp %250 : vector<16x16xf32>
    %cst_81 = arith.constant dense<0.000000e+00> : vector<16xf32>
    %252 = vector.multi_reduction <add>, %251, %cst_81 [1] : vector<16x16xf32> to vector<16xf32>
    %253 = vector.shape_cast %252 : vector<16xf32> to vector<16x1xf32>
    %254 = tpu.reciprocal %253 {approx = true} : vector<16x1xf32> -> vector<16x1xf32>
    %255 = vector.broadcast %254 : vector<16x1xf32> to vector<16x16xf32>
    %256 = arith.mulf %251, %255 : vector<16x16xf32>
    %cst_82 = arith.constant dense<0.000000e+00> : vector<16x8xf32>
    %257 = tpu.matmul %256, %244, %cst_82 {dimension_numbers = #tpu.dot_dimension_numbers<[1], [0], [0], [1], [0, 0, 1, 1], [], []>} : vector<16x16xf32>, vector<16x8xf32>, vector<16x8xf32> -> vector<16x8xf32>
    %258 = tpu.concatenate %203, %221, %239, %257 in 1 : vector<16x8xf32>, vector<16x8xf32>, vector<16x8xf32>, vector<16x8xf32> -> vector<16x32xf32>
    %cst_83 = arith.constant dense<0.000000e+00> : vector<16x32xf32>
    %259 = tpu.matmul %258, %1, %cst_83 {dimension_numbers = #tpu.dot_dimension_numbers<[1], [0], [0], [1], [0, 0, 1, 1], [], []>} : vector<16x32xf32>, vector<32x32xf32>, vector<16x32xf32> -> vector<16x32xf32>
    %260 = arith.addf %183, %259 : vector<16x32xf32>
    %261 = arith.addf %260, %11 : vector<16x32xf32>
    %cst_84 = arith.constant dense<0.000000e+00> : vector<16xf32>
    %262 = vector.multi_reduction <add>, %261, %cst_84 [1] : vector<16x32xf32> to vector<16xf32>
    %263 = vector.shape_cast %262 : vector<16xf32> to vector<16x1xf32>
    %cst_85 = arith.constant 3.125000e-02 : f32
    %264 = vector.broadcast %cst_85 : f32 to vector<16x1xf32>
    %265 = arith.mulf %263, %264 : vector<16x1xf32>
    %266 = arith.mulf %261, %261 : vector<16x32xf32>
    %cst_86 = arith.constant dense<0.000000e+00> : vector<16xf32>
    %267 = vector.multi_reduction <add>, %266, %cst_86 [1] : vector<16x32xf32> to vector<16xf32>
    %268 = vector.shape_cast %267 : vector<16xf32> to vector<16x1xf32>
    %cst_87 = arith.constant 3.125000e-02 : f32
    %269 = vector.broadcast %cst_87 : f32 to vector<16x1xf32>
    %270 = arith.mulf %268, %269 : vector<16x1xf32>
    %271 = arith.mulf %265, %265 : vector<16x1xf32>
    %272 = arith.subf %270, %271 : vector<16x1xf32>
    %273 = vector.broadcast %265 : vector<16x1xf32> to vector<16x32xf32>
    %274 = arith.subf %261, %273 : vector<16x32xf32>
    %cst_88 = arith.constant 9.99999997E-7 : f32
    %275 = vector.broadcast %cst_88 : f32 to vector<16x1xf32>
    %276 = arith.addf %272, %275 : vector<16x1xf32>
    %277 = math.rsqrt %276 : vector<16x1xf32>
    %278 = vector.broadcast %277 : vector<16x1xf32> to vector<16x32xf32>
    %279 = arith.mulf %274, %278 : vector<16x32xf32>
    %cst_89 = arith.constant dense<0.000000e+00> : vector<16x64xf32>
    %280 = tpu.matmul %279, %2, %cst_89 {dimension_numbers = #tpu.dot_dimension_numbers<[1], [0], [0], [1], [0, 0, 1, 1], [], []>} : vector<16x32xf32>, vector<32x64xf32>, vector<16x64xf32> -> vector<16x64xf32>
    %281 = arith.addf %280, %14 : vector<16x64xf32>
    %cst_90 = arith.constant 5.000000e-01 : f32
    %282 = vector.broadcast %cst_90 : f32 to vector<16x64xf32>
    %283 = arith.mulf %282, %281 : vector<16x64xf32>
    %cst_91 = arith.constant 4.471500e-02 : f32
    %284 = vector.broadcast %cst_91 : f32 to vector<16x64xf32>
    %285 = arith.mulf %284, %281 : vector<16x64xf32>
    %286 = arith.mulf %285, %281 : vector<16x64xf32>
    %287 = arith.mulf %286, %281 : vector<16x64xf32>
    %288 = arith.addf %281, %287 : vector<16x64xf32>
    %cst_92 = arith.constant 0.797884583 : f32
    %289 = vector.broadcast %cst_92 : f32 to vector<16x64xf32>
    %290 = arith.mulf %289, %288 : vector<16x64xf32>
    %291 = math.tanh %290 : vector<16x64xf32>
    %cst_93 = arith.constant 1.000000e+00 : f32
    %292 = vector.broadcast %cst_93 : f32 to vector<16x64xf32>
    %293 = arith.addf %292, %291 : vector<16x64xf32>
    %294 = arith.mulf %283, %293 : vector<16x64xf32>
    %cst_94 = arith.constant dense<0.000000e+00> : vector<16x32xf32>
    %295 = tpu.matmul %294, %3, %cst_94 {dimension_numbers = #tpu.dot_dimension_numbers<[1], [0], [0], [1], [0, 0, 1, 1], [], []>} : vector<16x64xf32>, vector<64x32xf32>, vector<16x32xf32> -> vector<16x32xf32>
    %296 = arith.addf %261, %295 : vector<16x32xf32>
    %297 = arith.addf %296, %17 : vector<16x32xf32>
    %298 = vector.extract_strided_slice %297 {offsets = [7, 0], sizes = [1, 32], strides = [1, 1]} : vector<16x32xf32> to vector<1x32xf32>
    %299 = vector.extract_strided_slice %297 {offsets = [15, 0], sizes = [1, 32], strides = [1, 1]} : vector<16x32xf32> to vector<1x32xf32>
    %300 = tpu.concatenate %298, %299 in 0 : vector<1x32xf32>, vector<1x32xf32> -> vector<2x32xf32>
    %c0_95 = arith.constant 0 : index
    %c0_96 = arith.constant 0 : index
    %301 = vector.load %arg7[%c0_95, %c0_96] : memref<32x32xf32, #tpu.memory_space<vmem>>, vector<32x32xf32>
    %cst_97 = arith.constant dense<0.000000e+00> : vector<2x32xf32>
    %302 = tpu.matmul %300, %301, %cst_97 {dimension_numbers = #tpu.dot_dimension_numbers<[1], [0], [0], [1], [0, 0, 1, 1], [], []>} : vector<2x32xf32>, vector<32x32xf32>, vector<2x32xf32> -> vector<2x32xf32>
    %303 = vector.broadcast %18 : vector<1x32xf32> to vector<2x32xf32>
    %304 = arith.addf %302, %303 : vector<2x32xf32>
    %c0_98 = arith.constant 0 : index
    %c0_99 = arith.constant 0 : index
    %305 = vector.load %arg10[%c0_98, %c0_99] : memref<2x32xf32, #tpu.memory_space<vmem>>, vector<2x32xf32>
    tpu.vector_store %arg10[%c0_98, %c0_99], %304 {strides = array<i32>} : memref<2x32xf32, #tpu.memory_space<vmem>>, vector<2x32xf32>,
    return
  }
}

</mosaic_0001>

<bundles_post_ra>
// kernel: tpu_custom_call.1
= control target key start
LH: loop header
LB: loop body
LE: loop exit
PB: predicated region body
PF: predicated region fallthrough
CT: control target
= control target key end

     0   :  { %15 = vsyncpa [#allocation3], 0  ;;  %s4242_s0 = inlined_call_operand.vmem [shape: f32[16,4], index: 0, kind: input, shape index: {}]   ;;  %s4243_s1 = inlined_call_operand.hbm [shape: f32[16,32], index: 1, kind: input, shape index: {}]   ;;  %s4244_s2 = inlined_call_operand.vmem [shape: f32[4,32], index: 2, kind: input, shape index: {}]   ;;  %s4245_s3 = inlined_call_operand.vmem [shape: f32[32,96], index: 3, kind: input, shape index: {}]   ;;  %s4246_s4 = inlined_call_operand.vmem [shape: f32[32,32], index: 4, kind: input, shape index: {}]   ;;  %s4247_s5 = inlined_call_operand.vmem [shape: f32[32,64], index: 5, kind: input, shape index: {}]   ;;  %s4248_s6 = inlined_call_operand.vmem [shape: f32[64,32], index: 6, kind: input, shape index: {}]   ;;  %s4249_s7 = inlined_call_operand.hbm [shape: f32[32,32], index: 7, kind: input, shape index: {}]   ;;  %s4250_s8 = inlined_call_operand.vmem [shape: f32[1,128], index: 8, kind: input, shape index: {}]   ;;  %s4251_s9 = inlined_call_operand.vmem [shape: f32[1,128], index: 9, kind: input, shape index: {}]   ;;  %s4252_s10 = inlined_call_operand.hbm [shape: f32[2,32], index: 10, kind: output, shape index: {}]  }
   0x1   :  { %16 = vsyncpa [#allocation6], 0 }
   0x2   :  { %17 = vsyncpa [#allocation4], 0  ;;  %s3646_s13 = smov [#allocation2]   ;;  %s3574_s17 = scalar_lea.hbm %s4243_s1, 256 }
   0x3   :  { %s25_s14 = sshll.u32 %s3646_s13, 4  ;;  %p3575_p0 = scmp.ne.s32.totalorder %s4243_s1, %s3574_s17  ;;  %s26_s14 = int_to_ptr.vmem [resolvable:$true] %s25_s14 }
   0x4   :  { %p3578_p1 = scmp.lt.u32.totalorder %s3574_s17, %s4243_s1 }
   0x6   :  { %p3580_p2 = pnand %p3578_p1, %p3575_p0 }
   0x8   :  { %3583 = shalt.err (!%p3580_p2)
}
   0x9   :  { %s3584_s22 = scalar_lea.vmem %s26_s14, 256  ;;  %p3589_p4 = scmp.lt.s32.totalorder %s26_s14, %s26_s14 }
   0xa   :  { %p3585_p3 = scmp.ne.s32.totalorder %s26_s14, %s3584_s22  ;;  %p3590_p5 = scmp.lt.s32.totalorder %s3584_s22, %s3584_s22 }
   0xc   :  { %p3591_p6 = por %p3590_p5, %p3589_p4 }
   0xe   :  { %p3592_p7 = pnand %p3591_p6, %p3585_p3 }
  0x10   :  { %3595 = shalt.err (!%p3592_p7)
}
  0x11   :  { %s3647_s23 = smov 128   ;;  %s3648_s24 = smov 8  }
  0x12   :  { %31 = dma.hbm_to_vmem [thread:$0]  %s4243_s1, 256, %s26_s14, [#allocation3], %s3647_s23, %s3647_s23, %s3648_s24  }
  0x13   :  { %s3649_s27 = smov [#allocation5]   ;;  %s3596_s11 = scalar_lea.hbm %s4249_s7, 512 }
  0x14   :  { %s47_s28 = sshll.u32 %s3649_s27, 4  ;;  %p3597_p8 = scmp.ne.s32.totalorder %s4249_s7, %s3596_s11  ;;  %s48_s28 = int_to_ptr.vmem [resolvable:$true] %s47_s28 }
  0x15   :  { %p3600_p9 = scmp.lt.u32.totalorder %s3596_s11, %s4249_s7 }
  0x17   :  { %p3602_p10 = pnand %p3600_p9, %p3597_p8 }
  0x19   :  { %3605 = shalt.err (!%p3602_p10)
}
  0x1a   :  { %s3606_s17 = scalar_lea.vmem %s48_s28, 512  ;;  %p3611_p12 = scmp.lt.s32.totalorder %s48_s28, %s48_s28 }
  0x1b   :  { %p3607_p11 = scmp.ne.s32.totalorder %s48_s28, %s3606_s17  ;;  %p3612_p13 = scmp.lt.s32.totalorder %s3606_s17, %s3606_s17 }
  0x1d   :  { %p3613_p0 = por %p3612_p13, %p3611_p12 }
  0x1f   :  { %p3614_p1 = pnand %p3613_p0, %p3607_p11 }
  0x21   :  { %3617 = shalt.err (!%p3614_p1)
}
  0x22   :  { %53 = dma.hbm_to_vmem [thread:$0]  %s4249_s7, 512, %s48_s28, [#allocation6], %s3647_s23, %s3647_s23, %s3648_s24  }
  0x23   :  { %3640 = dma.done.wait [#allocation3], 256  }
  0x24   :  { %3641 = vsyncadd [#allocation3], 4294967040 }
  0x25   :  { %3642 = dma.done.wait [#allocation6], 512  }
  0x26   :  { %3643 = vsyncadd [#allocation6], 4294966784  ;;  %vm141_vm0 = vcmask 1043456   ;;  %vm134_vm1 = vcmask 31744   ;;  %v131_v0 = vld [vmem:[%s4244_s2] sm:$0xf]  ;;  %v101_v54 = vlaneseq }
  0x27   :  { %v129_v1 = vld [vmem:[%s4242_s0] sm:$0xff]  ;;  %v130_v2 = vld [vmem:[%s4242_s0 + $0x8] sm:$0xff]  ;;  %2989 = vmatprep.subr.msk.mxu0 %vm141_vm0, %v131_v0  ;;  %vm220_vm2 = vcmask 261120   ;;  %v66_v17 = vld [vmem:[%s4245_s3 + $0x10] sm:$0xff]  ;;  %vm340_vm3 = vcmask 64512   ;;  %s3650_s11 = smov 96  }
  0x28   :  { %2991 = vmatprep.mubr.msk.f32.mxu0 %vm134_vm1, %v129_v1  ;;  %2990 = vmatpush3.msk.msra.mxu0 %vm141_vm0, %v131_v0  ;;  %v133_v3 = vld [vmem:[#allocation2 + $0x8] sm:$0xff]  ;;  %v132_v4 = vld [vmem:[#allocation2] sm:$0xff]  ;;  %v67_v19 = vld [vmem:[%s4245_s3 + $0x18] sm:$0xff]  ;;  %s3652_s12 = smov 120   ;;  %v102_v55 = vand.u32 127, %v101_v54  ;;  %vm426_vm9 = vcmask 130048  }
  0x29   :  { %2992 = vmatmul.mubr.msk.f32.vlgmr.msra.gmra.mrb[0].mxu0 %vm134_vm1, %v130_v2  ;;  %v64_v15 = vld [vmem:[%s4245_s3] sm:$0xff]  ;;  %v65_v16 = vld [vmem:[%s4245_s3 + $0x8] sm:$0xff]  ;;  %v3777_v20 = vpack.c.bf16 %v67_v19, %v66_v17  ;;  %vm3816_vm4 = vmpackc.low %vm340_vm3, %vm340_vm3  ;;  %v3653_v56 = vmov -1e+30   ;;  %s3654_s13 = smov 64   ;;  %s3655_s15 = smov 56  }
  0x2a   :  { %v3772_v18 = vpack.c.bf16 %v65_v16, %v64_v15  ;;  %v3794_v41 = vld [vmem:[%s4250_s8] ss:$0 sm:$0xff]  ;;  %s3651_s8 = smov 88   ;;  %vm120_vm5 = vcmp.ge.s32.totalorder %v102_v55, 8  ;;  %vm121_vm6 = vcmp.lt.s32.totalorder %v102_v55, 16  ;;  %vm110_vm7 = vcmp.lt.s32.totalorder %v102_v55, 8 }
  0x2b   :  { %vm122_vm8 = vmand %vm120_vm5, %vm121_vm6  ;;  %v3826_v57 = vsel %vm110_vm7, 0.0, %v3653_v56  ;;  %s3656_s16 = smov 112   ;;  %s3657_s17 = smov 80   ;;  %vm1164_vm10 = vcmask 195584   ;;  %vm1384_vm11 = vcmask 523264   ;;  %vm3666_vm12 = vmmov 0  }
  0x2c   :  { %3222 = vmatprep.subr.bf16.mxu1 %v3772_v18  ;;  %v3828_v59 = vsel %vm122_vm8, 0.0, %v3653_v56  ;;  %s3658_s1 = smov 48   ;;  %s3659_s14 = smov 104   ;;  %vm2691_vm13 = vcmask 1040384   ;;  %vm2773_vm14 = vcmask 254976  }
  0x2d   :  { %3224 = vmatpush3.bf16.msra.mxu1 %v3772_v18  ;;  %s3660_s18 = smov 72   ;;  %s3661_s19 = smov 40  }
  0x2e   :  { %3226 = vmatprep.subr.bf16.mxu1 %v3777_v20  ;;  %s3662_s20 = smov 16   ;;  %s3663_s27 = smov 24  }
  0x2f   :  { %s3664_s28 = smov 32  }
  0x31   :  { %3228 = vmatpush3.bf16.msra.mxu1 %v3777_v20 }
  0xfc   :  { %v2993_v5 = vpop.f32.mrb[0].mxu0 }
  0xfd   :  { %v211_v6 = vpop.f32.mrb[1].mxu0  ;;  %v217_v7 = vadd.f32 %v2993_v5, %v133_v3 }
  0xfe   :  { %v212_v8 = vadd.f32 %v211_v6, %v132_v4 }
  0xff   :  { %v230_v12 = vmul.f32 %v217_v7, %v217_v7  ;;  %v224_v13 = vsel %vm220_vm2, %v217_v7, 0.0 }
 0x100   :  { %v221_v9 = vsel %vm220_vm2, %v212_v8, 0.0  ;;  %v229_v10 = vmul.f32 %v212_v8, %v212_v8 }
 0x101   :  { %222 = vadd.xlane.f32.xlu0 %v221_v9  ;;  %v234_v14 = vsel %vm220_vm2, %v230_v12, 0.0 }
 0x102   :  { %v231_v11 = vsel %vm220_vm2, %v229_v10, 0.0 }
 0x103   :  { %232 = vadd.xlane.f32.xlu1 %v231_v11 }
 0x105   :  { %225 = vadd.xlane.f32.xlu0 %v224_v13 }
 0x107   :  { %235 = vadd.xlane.f32.xlu1 %v234_v14 }
 0x18e   :  { %v223_v21 = vpop.xlane.xlu0 %222 }
 0x18f   :  { %v227_v22 = vmul.f32 0.03125, %v223_v21 }
 0x190   :  { %v233_v23 = vpop.xlane.xlu1 %232 }
 0x191   :  { %v239_v24 = vmul.f32 %v227_v22, %v227_v22  ;;  %v237_v25 = vmul.f32 0.03125, %v233_v23  ;;  %v243_v35 = vsub.f32 %v212_v8, %v227_v22 }
 0x192   :  { %v226_v26 = vpop.xlane.xlu0 %225 }
 0x193   :  { %v241_v27 = vsub.f32 %v237_v25, %v239_v24  ;;  %v228_v28 = vmul.f32 0.03125, %v226_v26 }
 0x194   :  { %v236_v29 = vpop.xlane.xlu1 %235 }
 0x195   :  { %v245_v30 = vadd.f32 1e-06, %v241_v27  ;;  %v240_v31 = vmul.f32 %v228_v28, %v228_v28  ;;  %v238_v32 = vmul.f32 0.03125, %v236_v29  ;;  %v244_v38 = vsub.f32 %v217_v7, %v228_v28 }
 0x197   :  { %3490 = vrsqrt.f32 %v245_v30  ;;  %v242_v33 = vsub.f32 %v238_v32, %v240_v31 }
 0x199   :  { %v246_v34 = vadd.f32 1e-06, %v242_v33 }
 0x19b   :  { %3492 = vrsqrt.f32 %v246_v34 }
 0x1a1   :  { %v3491_v36 = vpop.eup %3490 }
 0x1a2   :  { %v3783_v37 = vmul.f32 %v3491_v36, %v243_v35 }
 0x1a4   :  { %3002 = vmatprep.mubr.msk.f32.mxu1 %vm220_vm2, %v3783_v37 }
 0x1a5   :  { %v3493_v39 = vpop.eup %3492 }
 0x1a6   :  { %v3787_v40 = vmul.f32 %v3493_v39, %v244_v38 }
 0x1a8   :  { %3003 = vmatmul.mubr.msk.f32.vlgmr.msra.gmra.mrb[0].mxu1 %vm220_vm2, %v3787_v40 }
 0x27b   :  { %v3004_v42 = vpop.f32.mrb[0].mxu1 }
 0x27c   :  { %v329_v43 = vadd.f32 %v3004_v42, %v3794_v41  ;;  %v323_v44 = vpop.f32.mrb[1].mxu1 }
 0x27d   :  { %v324_v45 = vadd.f32 %v3794_v41, %v323_v44 }
 0x27e   :  { %v3810_v48 = vmul.f32 0.35355338, %v329_v43 }
 0x27f   :  { %v3798_v46 = vpack.i.bf16 %v329_v43, %v324_v45  ;;  %v3800_v47 = vmul.f32 0.35355338, %v324_v45 }
 0x281   :  { %3411 = vrot.lane.b32.xlu0 %v3798_v46, %s3650_s11  ;;  %3009 = vmatprep.mubr.msk.f32.mxu0 %vm340_vm3, %v3800_v47 }
 0x285   :  { %3421 = vrot.lane.b32.xlu0 %v3798_v46, %s3651_s8 }
 0x289   :  { %536 = vrot.lane.b32.xlu0 %v3800_v47, %s3652_s12 }
 0x28d   :  { %538 = vrot.lane.b32.xlu0 %v3810_v48, %s3652_s12 }
 0x2f3   :  { %v3412_v49 = vpop.permute.xlu0 %3411 }
 0x2f4   :  { %v3414_v50 = vunpack.i.h.bf16 %v3412_v49  ;;  %v3413_v51 = vunpack.i.l.bf16 %v3412_v49 }
 0x2f6   :  { %v3229_v53 = vpack.c.bf16 %v3414_v50, %v3413_v51 }
 0x2f7   :  { %v3422_v13 = vpop.permute.xlu0 %3421 }
 0x2f8   :  { %3231 = vmatprep.subr.msk.bf16.mxu0 %vm3816_vm4, %v3229_v53  ;;  %v3424_v15 = vunpack.i.h.bf16 %v3422_v13  ;;  %v3423_v16 = vunpack.i.l.bf16 %v3422_v13 }
 0x2f9   :  { %3234 = vmatpush3.bf16.xpose.msk.msra.mxu0 %vm3816_vm4, %v3229_v53 }
 0x2fa   :  { %v3239_v22 = vpack.c.bf16 %v3424_v15, %v3423_v16 }
 0x2fb   :  { %v537_v27 = vpop.permute.xlu0 %536 }
 0x2ff   :  { %v539_v28 = vpop.permute.xlu0 %538 }
 0x300   :  { %3010 = vmatmul.mubr.msk.f32.vlgmr.msra.gmra.mrb[2].mxu0 %vm340_vm3, %v3810_v48 }
 0x3d3   :  { %v3011_v58 = vpop.f32.mrb[2].mxu0 }
 0x3d4   :  { %v417_v60 = vpop.f32.mrb[3].mxu0  ;;  %v423_v62 = vadd.f32 %v3011_v58, %v3828_v59 }
 0x3d5   :  { %v418_v61 = vadd.f32 %v417_v60, %v3826_v57 }
 0x3d6   :  { %v430_v0 = vsel %vm426_vm9, %v423_v62, -inf }
 0x3d7   :  { %v427_v63 = vsel %vm426_vm9, %v418_v61, -inf }
 0x3d8   :  { %428 = vmax.xlane.f32.xlu1 %v427_v63 }
 0x3dc   :  { %431 = vmax.xlane.f32.xlu1 %v430_v0 }
 0x465   :  { %v429_v1 = vpop.xlane.xlu1 %428 }
 0x466   :  { %v433_v2 = vsub.f32 %v418_v61, %v429_v1 }
 0x468   :  { %v435_v5 = vmul.f32 1.442695, %v433_v2 }
 0x469   :  { %v432_v3 = vpop.xlane.xlu1 %431 }
 0x46a   :  { %v434_v4 = vsub.f32 %v423_v62, %v432_v3 }
 0x46c   :  { %v437_v6 = vmul.f32 1.442695, %v434_v4 }
 0x46e   :  { %3494 = vpow2.f32 %v437_v6 }
 0x46f   :  { %3496 = vpow2.f32 %v435_v5 }
 0x478   :  { %v3495_v7 = vpop.eup %3494 }
 0x479   :  { %v442_v8 = vsel %vm426_vm9, %v3495_v7, 0.0  ;;  %v3497_v9 = vpop.eup %3496 }
 0x47a   :  { %443 = vadd.xlane.f32.xlu1 %v442_v8  ;;  %v439_v10 = vsel %vm426_vm9, %v3497_v9, 0.0 }
 0x47e   :  { %440 = vadd.xlane.f32.xlu1 %v439_v10 }
 0x48f   :  { %3416 = vrot.lane.b32.xlu1 %v3798_v46, %s3654_s13 }
 0x507   :  { %v444_v11 = vpop.xlane.xlu1 %443 }
 0x508   :  { %3498 = vrcp.f32 %v444_v11 }
 0x50b   :  { %v441_v12 = vpop.xlane.xlu1 %440 }
 0x50c   :  { %3500 = vrcp.f32 %v441_v12 }
 0x50f   :  { %v3417_v14 = vpop.permute.xlu1 %3416 }
 0x510   :  { %v3419_v17 = vunpack.i.h.bf16 %v3417_v14  ;;  %v3418_v19 = vunpack.i.l.bf16 %v3417_v14 }
 0x512   :  { %v3235_v21 = vpack.c.bf16 %v3419_v17, %v3418_v19  ;;  %v3499_v23 = vpop.eup %3498 }
 0x513   :  { %v448_v26 = vmul.f32 %v3499_v23, %v3495_v7 }
 0x514   :  { %3236 = vmatprep.subr.bf16.mxu0 %v3235_v21 }
 0x515   :  { %3238 = vmatpush3.bf16.msra.mxu0 %v3235_v21 }
 0x516   :  { %v3501_v24 = vpop.eup %3500  ;;  %3241 = vmatprep.subr.msk.bf16.mxu0 %vm3816_vm4, %v3239_v22 }
 0x517   :  { %v447_v25 = vmul.f32 %v3501_v24, %v3497_v9 }
 0x519   :  { %3016 = vmatprep.mubr.msk.f32.mxu0 %vm426_vm9, %v447_v25 }
 0x51a   :  { %3017 = vmatmul.mubr.msk.f32.vlgmr.msra.gmra.mrb[4].mxu0 %vm426_vm9, %v448_v26 }
 0x51b   :  { %3023 = vmatprep.mubr.msk.f32.mxu0 %vm340_vm3, %v537_v27 }
 0x51e   :  { %3244 = vmatpush3.bf16.xpose.msk.msra.mxu0 %vm3816_vm4, %v3239_v22 }
 0x525   :  { %3024 = vmatmul.mubr.msk.f32.vlgmr.msra.gmra.mrb[6].mxu0 %vm340_vm3, %v539_v28 }
 0x5ed   :  { %v3846_v29 = vpop.f32.mrb[4].mxu0 }
 0x5ee   :  { %v3848_v30 = vpop.f32.mrb[5].mxu0 }
 0x5f8   :  { %v3025_v31 = vpop.f32.mrb[6].mxu0 }
 0x5f9   :  { %v624_v32 = vadd.f32 %v3025_v31, %v3828_v59  ;;  %v618_v33 = vpop.f32.mrb[7].mxu0 }
 0x5fa   :  { %v619_v34 = vadd.f32 %v618_v33, %v3826_v57 }
 0x5fb   :  { %v630_v35 = vsel %vm426_vm9, %v624_v32, -inf }
 0x5fc   :  { %631 = vmax.xlane.f32.xlu0 %v630_v35  ;;  %v627_v36 = vsel %vm426_vm9, %v619_v34, -inf }
 0x5fd   :  { %628 = vmax.xlane.f32.xlu1 %v627_v36 }
 0x60e   :  { %3426 = vrot.lane.b32.xlu1 %v3798_v46, %s3655_s15 }
 0x612   :  { %736 = vrot.lane.b32.xlu1 %v3800_v47, %s3656_s16 }
 0x616   :  { %738 = vrot.lane.b32.xlu1 %v3810_v48, %s3656_s16 }
 0x689   :  { %v632_v38 = vpop.xlane.xlu0 %631 }
 0x68a   :  { %v634_v39 = vsub.f32 %v624_v32, %v632_v38  ;;  %v629_v42 = vpop.xlane.xlu1 %628 }
 0x68b   :  { %v633_v43 = vsub.f32 %v619_v34, %v629_v42 }
 0x68c   :  { %v637_v44 = vmul.f32 1.442695, %v634_v39 }
 0x68d   :  { %v635_v45 = vmul.f32 1.442695, %v633_v43 }
 0x68e   :  { %3502 = vpow2.f32 %v637_v44  ;;  %v3427_v49 = vpop.permute.xlu1 %3426 }
 0x68f   :  { %v3429_v50 = vunpack.i.h.bf16 %v3427_v49  ;;  %v3428_v51 = vunpack.i.l.bf16 %v3427_v49  ;;  %3504 = vpow2.f32 %v635_v45 }
 0x691   :  { %v3245_v53 = vpack.c.bf16 %v3429_v50, %v3428_v51 }
 0x692   :  { %v737_v6 = vpop.permute.xlu1 %736 }
 0x693   :  { %3246 = vmatprep.subr.bf16.mxu1 %v3245_v53 }
 0x694   :  { %3248 = vmatpush3.bf16.msra.mxu1 %v3245_v53 }
 0x696   :  { %v739_v7 = vpop.permute.xlu1 %738 }
 0x698   :  { %v3503_v54 = vpop.eup %3502 }
 0x699   :  { %v642_v55 = vsel %vm426_vm9, %v3503_v54, 0.0  ;;  %v3505_v56 = vpop.eup %3504 }
 0x69a   :  { %643 = vadd.xlane.f32.xlu0 %v642_v55  ;;  %v639_v58 = vsel %vm426_vm9, %v3505_v56, 0.0 }
 0x69e   :  { %640 = vadd.xlane.f32.xlu0 %v639_v58 }
 0x6b4   :  { %3431 = vrot.lane.b32.xlu0 %v3798_v46, %s3657_s17 }
 0x727   :  { %v644_v60 = vpop.xlane.xlu0 %643 }
 0x728   :  { %3506 = vrcp.f32 %v644_v60 }
 0x72b   :  { %v641_v61 = vpop.xlane.xlu0 %640 }
 0x72c   :  { %3508 = vrcp.f32 %v641_v61 }
 0x72f   :  { %v3432_v62 = vpop.permute.xlu0 %3431 }
 0x730   :  { %v3434_v63 = vunpack.i.h.bf16 %v3432_v62  ;;  %v3433_v0 = vunpack.i.l.bf16 %v3432_v62 }
 0x732   :  { %v3249_v1 = vpack.c.bf16 %v3434_v63, %v3433_v0  ;;  %v3507_v2 = vpop.eup %3506 }
 0x733   :  { %v648_v5 = vmul.f32 %v3507_v2, %v3503_v54 }
 0x734   :  { %3251 = vmatprep.subr.msk.bf16.mxu1 %vm3816_vm4, %v3249_v1 }
 0x736   :  { %v3509_v3 = vpop.eup %3508 }
 0x737   :  { %v647_v4 = vmul.f32 %v3509_v3, %v3505_v56 }
 0x739   :  { %3030 = vmatprep.mubr.msk.f32.mxu1 %vm426_vm9, %v647_v4 }
 0x73a   :  { %3031 = vmatmul.mubr.msk.f32.vlgmr.msra.gmra.mrb[2].mxu1 %vm426_vm9, %v648_v5 }
 0x73b   :  { %3254 = vmatpush3.bf16.xpose.msk.msra.mxu1 %vm3816_vm4, %v3249_v1  ;;  %3037 = vmatprep.mubr.msk.f32.mxu1 %vm340_vm3, %v737_v6 }
 0x742   :  { %3038 = vmatmul.mubr.msk.f32.vlgmr.msra.gmra.mrb[4].mxu1 %vm340_vm3, %v739_v7 }
 0x80d   :  { %v3872_v8 = vpop.f32.mrb[2].mxu1 }
 0x80e   :  { %v3874_v9 = vpop.f32.mrb[3].mxu1 }
 0x815   :  { %v3039_v10 = vpop.f32.mrb[4].mxu1 }
 0x816   :  { %v824_v11 = vadd.f32 %v3039_v10, %v3828_v59  ;;  %v818_v12 = vpop.f32.mrb[5].mxu1 }
 0x817   :  { %v819_v13 = vadd.f32 %v818_v12, %v3826_v57 }
 0x818   :  { %v830_v14 = vsel %vm426_vm9, %v824_v11, -inf }
 0x819   :  { %831 = vmax.xlane.f32.xlu0 %v830_v14  ;;  %v827_v15 = vsel %vm426_vm9, %v819_v13, -inf }
 0x81a   :  { %828 = vmax.xlane.f32.xlu1 %v827_v15 }
 0x82b   :  { %3436 = vrot.lane.b32.xlu1 %v3798_v46, %s3658_s1 }
 0x82f   :  { %936 = vrot.lane.b32.xlu1 %v3800_v47, %s3659_s14 }
 0x833   :  { %938 = vrot.lane.b32.xlu1 %v3810_v48, %s3659_s14 }
 0x8a6   :  { %v832_v16 = vpop.xlane.xlu0 %831 }
 0x8a7   :  { %v834_v17 = vsub.f32 %v824_v11, %v832_v16  ;;  %v829_v19 = vpop.xlane.xlu1 %828 }
 0x8a8   :  { %v833_v21 = vsub.f32 %v819_v13, %v829_v19  ;;  %v70_v19 = vld [vmem:[%s4246_s4 + $0x10] sm:$0xff] }
 0x8a9   :  { %v837_v22 = vmul.f32 1.442695, %v834_v17  ;;  %v68_v17 = vld [vmem:[%s4246_s4] sm:$0xff] }
 0x8aa   :  { %v835_v23 = vmul.f32 1.442695, %v833_v21 }
 0x8ab   :  { %3510 = vpow2.f32 %v837_v22  ;;  %v3437_v24 = vpop.permute.xlu1 %3436  ;;  %v71_v22 = vld [vmem:[%s4246_s4 + $0x18] sm:$0xff] }
 0x8ac   :  { %v3439_v25 = vunpack.i.h.bf16 %v3437_v24  ;;  %v3438_v26 = vunpack.i.l.bf16 %v3437_v24  ;;  %3512 = vpow2.f32 %v835_v23  ;;  %v3928_v23 = vpack.c.bf16 %v71_v22, %v70_v19  ;;  %v76_v19 = vld [vmem:[%s4248_s6] sm:$0xff] }
 0x8ae   :  { %v3255_v27 = vpack.c.bf16 %v3439_v25, %v3438_v26 }
 0x8af   :  { %v937_v45 = vpop.permute.xlu1 %936 }
 0x8b0   :  { %3256 = vmatprep.subr.bf16.mxu0 %v3255_v27 }
 0x8b1   :  { %3258 = vmatpush3.bf16.msra.mxu0 %v3255_v27 }
 0x8b3   :  { %v939_v49 = vpop.permute.xlu1 %938 }
 0x8b5   :  { %v3511_v28 = vpop.eup %3510 }
 0x8b6   :  { %v842_v47 = vsel %vm426_vm9, %v3511_v28, 0.0  ;;  %v3513_v31 = vpop.eup %3512 }
 0x8b7   :  { %843 = vadd.xlane.f32.xlu0 %v842_v47  ;;  %v839_v48 = vsel %vm426_vm9, %v3513_v31, 0.0 }
 0x8bb   :  { %840 = vadd.xlane.f32.xlu0 %v839_v48 }
 0x8d1   :  { %3441 = vrot.lane.b32.xlu0 %v3798_v46, %s3660_s18 }
 0x944   :  { %v844_v32 = vpop.xlane.xlu0 %843 }
 0x945   :  { %3514 = vrcp.f32 %v844_v32 }
 0x948   :  { %v841_v33 = vpop.xlane.xlu0 %840 }
 0x949   :  { %3516 = vrcp.f32 %v841_v33 }
 0x94c   :  { %v3442_v34 = vpop.permute.xlu0 %3441 }
 0x94d   :  { %v3444_v35 = vunpack.i.h.bf16 %v3442_v34  ;;  %v3443_v36 = vunpack.i.l.bf16 %v3442_v34 }
 0x94f   :  { %v3259_v38 = vpack.c.bf16 %v3444_v35, %v3443_v36  ;;  %v3515_v39 = vpop.eup %3514 }
 0x950   :  { %v848_v44 = vmul.f32 %v3515_v39, %v3511_v28 }
 0x951   :  { %3261 = vmatprep.subr.msk.bf16.mxu0 %vm3816_vm4, %v3259_v38 }
 0x953   :  { %v3517_v42 = vpop.eup %3516 }
 0x954   :  { %v847_v43 = vmul.f32 %v3517_v42, %v3513_v31 }
 0x956   :  { %3044 = vmatprep.mubr.msk.f32.mxu0 %vm426_vm9, %v847_v43 }
 0x957   :  { %3045 = vmatmul.mubr.msk.f32.vlgmr.msra.gmra.mrb[8].mxu0 %vm426_vm9, %v848_v44 }
 0x958   :  { %3264 = vmatpush3.bf16.xpose.msk.msra.mxu0 %vm3816_vm4, %v3259_v38  ;;  %3051 = vmatprep.mubr.msk.f32.mxu0 %vm340_vm3, %v937_v45 }
 0x95f   :  { %3052 = vmatmul.mubr.msk.f32.vlgmr.msra.gmra.mrb[10].mxu0 %vm340_vm3, %v939_v49 }
 0xa2a   :  { %v3046_v50 = vpop.f32.mrb[8].mxu0 }
 0xa2b   :  { %v927_v51 = vpop.f32.mrb[9].mxu0 }
 0xa32   :  { %v3053_v53 = vpop.f32.mrb[10].mxu0 }
 0xa33   :  { %v1024_v54 = vadd.f32 %v3053_v53, %v3828_v59  ;;  %v1018_v55 = vpop.f32.mrb[11].mxu0 }
 0xa34   :  { %v1019_v56 = vadd.f32 %v1018_v55, %v3826_v57  ;;  %v73_v55 = vld [vmem:[%s4247_s5 + $0x8] sm:$0xff] }
 0xa35   :  { %v1030_v58 = vsel %vm426_vm9, %v1024_v54, -inf }
 0xa36   :  { %1031 = vmax.xlane.f32.xlu0 %v1030_v58  ;;  %v1027_v60 = vsel %vm426_vm9, %v1019_v56, -inf }
 0xa37   :  { %1028 = vmax.xlane.f32.xlu1 %v1027_v60  ;;  %v75_v60 = vld [vmem:[%s4247_s5 + $0x18] sm:$0xff] }
 0xa48   :  { %3446 = vrot.lane.b32.xlu1 %v3798_v46, %s3661_s19 }
 0xa4c   :  { %1140 = vrot.lane.b32.xlu1 %v3872_v8, %s3648_s24 }
 0xa50   :  { %1146 = vrot.lane.b32.xlu1 %v927_v51, %s3662_s20 }
 0xa54   :  { %1148 = vrot.lane.b32.xlu1 %v3046_v50, %s3662_s20 }
 0xac3   :  { %v1032_v61 = vpop.xlane.xlu0 %1031 }
 0xac4   :  { %v1034_v62 = vsub.f32 %v1024_v54, %v1032_v61  ;;  %v1029_v63 = vpop.xlane.xlu1 %1028  ;;  %v72_v54 = vld [vmem:[%s4247_s5] sm:$0xff] }
 0xac5   :  { %v1033_v0 = vsub.f32 %v1019_v56, %v1029_v63  ;;  %v74_v56 = vld [vmem:[%s4247_s5 + $0x10] sm:$0xff]  ;;  %v3977_v58 = vpack.c.bf16 %v73_v55, %v72_v54 }
 0xac6   :  { %v1037_v1 = vmul.f32 1.442695, %v1034_v62  ;;  %v3982_v61 = vpack.c.bf16 %v75_v60, %v74_v56 }
 0xac7   :  { %v1035_v2 = vmul.f32 1.442695, %v1033_v0  ;;  %3278 = vmatprep.subr.bf16.mxu0 %v3977_v58 }
 0xac8   :  { %v3447_v3 = vpop.permute.xlu1 %3446  ;;  %3280 = vmatpush3.bf16.msra.mxu0 %v3977_v58 }
 0xac9   :  { %3518 = vpow2.f32 %v1035_v2  ;;  %v3449_v4 = vunpack.i.h.bf16 %v3447_v3  ;;  %v3448_v5 = vunpack.i.l.bf16 %v3447_v3  ;;  %3282 = vmatprep.subr.bf16.mxu0 %v3982_v61 }
 0xaca   :  { %3520 = vpow2.f32 %v1037_v1 }
 0xacb   :  { %v3265_v46 = vpack.c.bf16 %v3449_v4, %v3448_v5 }
 0xacc   :  { %v1141_v26 = vpop.permute.xlu1 %1140  ;;  %3284 = vmatpush3.bf16.msra.mxu0 %v3982_v61 }
 0xacd   :  { %3266 = vmatprep.subr.bf16.mxu1 %v3265_v46  ;;  %v1161_v32 = vsel %vm340_vm3, %v3846_v29, %v1141_v26  ;;  %3302 = vmatprep.subr.bf16.mxu0 %v3772_v18 }
 0xace   :  { %3268 = vmatpush3.bf16.msra.mxu1 %v3265_v46 }
 0xad0   :  { %v1147_v27 = vpop.permute.xlu1 %1146 }
 0xad3   :  { %v3519_v6 = vpop.eup %3518 }
 0xad4   :  { %v1039_v7 = vsel %vm426_vm9, %v3519_v6, 0.0  ;;  %v3521_v8 = vpop.eup %3520  ;;  %v1149_v47 = vpop.permute.xlu1 %1148 }
 0xad5   :  { %1040 = vadd.xlane.f32.xlu0 %v1039_v7  ;;  %v1042_v10 = vsel %vm426_vm9, %v3521_v8, 0.0  ;;  %v1163_v35 = vsel %vm426_vm9, %v1161_v32, %v1149_v47  ;;  %v82_v47 = vld [vmem:[%s4248_s6 + $0x30] sm:$0xff] }
 0xad9   :  { %1043 = vadd.xlane.f32.xlu0 %v1042_v10 }
 0xaef   :  { %1138 = vrot.lane.b32.xlu0 %v3874_v9, %s3648_s24  ;;  %v69_v9 = vld [vmem:[%s4246_s4 + $0x8] sm:$0xff] }
 0xaf0   :  { %v3923_v21 = vpack.c.bf16 %v69_v9, %v68_v17  ;;  %v3999_v9 = vld [vmem:[%s4251_s9] ss:$0 sm:$0xff] }
 0xaf2   :  { %3270 = vmatprep.subr.bf16.mxu1 %v3923_v21 }
 0xb62   :  { %v1041_v11 = vpop.xlane.xlu0 %1040 }
 0xb63   :  { %3522 = vrcp.f32 %v1041_v11 }
 0xb66   :  { %v1044_v12 = vpop.xlane.xlu0 %1043 }
 0xb67   :  { %3524 = vrcp.f32 %v1044_v12 }
 0xb6a   :  { %v1139_v28 = vpop.permute.xlu0 %1138 }
 0xb6b   :  { %v1160_v31 = vsel %vm340_vm3, %v3848_v30, %v1139_v28 }
 0xb6c   :  { %v1162_v33 = vsel %vm426_vm9, %v1160_v31, %v1147_v27  ;;  %v81_v27 = vld [vmem:[%s4248_s6 + $0x28] sm:$0xff]  ;;  %v83_v31 = vld [vmem:[%s4248_s6 + $0x38] sm:$0xff] }
 0xb6d   :  { %v3523_v13 = vpop.eup %3522 }
 0xb6e   :  { %v1047_v14 = vmul.f32 %v3523_v13, %v3519_v6 }
 0xb70   :  { %3058 = vmatprep.mubr.msk.f32.mxu1 %vm426_vm9, %v1047_v14 }
 0xb71   :  { %v3525_v15 = vpop.eup %3524 }
 0xb72   :  { %v1048_v16 = vmul.f32 %v3525_v15, %v3521_v8 }
 0xb74   :  { %3059 = vmatmul.mubr.msk.f32.vlgmr.msra.gmra.mrb[6].mxu1 %vm426_vm9, %v1048_v16 }
 0xb75   :  { %3272 = vmatpush3.bf16.msra.mxu1 %v3923_v21 }
 0xb76   :  { %3274 = vmatprep.subr.bf16.mxu1 %v3928_v23 }
 0xb79   :  { %3276 = vmatpush3.bf16.msra.mxu1 %v3928_v23 }
 0xc47   :  { %v3060_v24 = vpop.f32.mrb[6].mxu1 }
 0xc48   :  { %1156 = vrot.lane.b32.xlu1 %v3060_v24, %s3663_s27  ;;  %v1127_v25 = vpop.f32.mrb[7].mxu1  ;;  %v79_v24 = vld [vmem:[%s4248_s6 + $0x18] sm:$0xff] }
 0xc49   :  { %1154 = vrot.lane.b32.xlu0 %v1127_v25, %s3663_s27  ;;  %v80_v25 = vld [vmem:[%s4248_s6 + $0x20] sm:$0xff] }
 0xc4a   :  { %v4028_v28 = vpack.c.bf16 %v81_v27, %v80_v25 }
 0xc4d   :  { %1250 = vrot.lane.b32.xlu0 %v3794_v41, %s3664_s28 }
 0xcba   :  { %v1157_v48 = vpop.permute.xlu1 %1156 }
 0xcbb   :  { %v1155_v34 = vpop.permute.xlu0 %1154  ;;  %v1166_v38 = vsel %vm1164_vm10, %v1163_v35, %v1157_v48  ;;  %v4038_v48 = vpack.c.bf16 %v83_v31, %v82_v47 }
 0xcbc   :  { %v1165_v36 = vsel %vm1164_vm10, %v1162_v33, %v1155_v34 }
 0xcbd   :  { %3069 = vmatprep.mubr.msk.f32.mxu1 %vm220_vm2, %v1165_v36 }
 0xcbe   :  { %3070 = vmatmul.mubr.msk.f32.vlgmr.msra.gmra.mrb[8].mxu1 %vm220_vm2, %v1166_v38 }
 0xcbf   :  { %v3948_v30 = vpop.permute.xlu0 %1250 }
 0xd91   :  { %v3071_v39 = vpop.f32.mrb[8].mxu1 }
 0xd92   :  { %v1249_v42 = vadd.f32 %v3071_v39, %v3787_v40  ;;  %v1239_v43 = vpop.f32.mrb[9].mxu1 }
 0xd93   :  { %v1248_v29 = vadd.f32 %v1239_v43, %v3783_v37 }
 0xd94   :  { %v3953_v44 = vadd.f32 %v3948_v30, %v1249_v42 }
 0xd95   :  { %v3956_v45 = vadd.f32 %v3948_v30, %v1248_v29 }
 0xd96   :  { %v1258_v49 = vsel %vm220_vm2, %v3953_v44, 0.0  ;;  %v1264_v37 = vmul.f32 %v3953_v44, %v3953_v44 }
 0xd97   :  { %1259 = vadd.xlane.f32.xlu0 %v1258_v49  ;;  %v1255_v50 = vsel %vm220_vm2, %v3956_v45, 0.0  ;;  %v1263_v51 = vmul.f32 %v3956_v45, %v3956_v45 }
 0xd98   :  { %1256 = vadd.xlane.f32.xlu1 %v1255_v50  ;;  %v1268_v53 = vsel %vm220_vm2, %v1264_v37, 0.0 }
 0xd99   :  { %v1265_v40 = vsel %vm220_vm2, %v1263_v51, 0.0 }
 0xd9b   :  { %1266 = vadd.xlane.f32.xlu0 %v1265_v40 }
 0xd9f   :  { %1269 = vadd.xlane.f32.xlu0 %v1268_v53 }
 0xda9   :  { %1468 = vrot.lane.b32.xlu1 %v3999_v9, %s3654_s13 }
 0xe24   :  { %v1260_v62 = vpop.xlane.xlu0 %1259 }
 0xe25   :  { %v1257_v63 = vpop.xlane.xlu1 %1256  ;;  %v1262_v3 = vmul.f32 0.03125, %v1260_v62 }
 0xe26   :  { %v1261_v0 = vmul.f32 0.03125, %v1257_v63 }
 0xe27   :  { %v1274_v6 = vmul.f32 %v1262_v3, %v1262_v3  ;;  %v1278_v15 = vsub.f32 %v3953_v44, %v1262_v3 }
 0xe28   :  { %v1273_v1 = vmul.f32 %v1261_v0, %v1261_v0  ;;  %v1267_v2 = vpop.xlane.xlu0 %1266  ;;  %v1277_v12 = vsub.f32 %v3956_v45, %v1261_v0 }
 0xe29   :  { %v1271_v4 = vmul.f32 0.03125, %v1267_v2  ;;  %v4048_v3 = vpop.permute.xlu1 %1468 }
 0xe2b   :  { %v1275_v5 = vsub.f32 %v1271_v4, %v1273_v1 }
 0xe2c   :  { %v1270_v46 = vpop.xlane.xlu0 %1269 }
 0xe2d   :  { %v1279_v7 = vadd.f32 1e-06, %v1275_v5  ;;  %v1272_v8 = vmul.f32 0.03125, %v1270_v46 }
 0xe2f   :  { %3526 = vrsqrt.f32 %v1279_v7  ;;  %v1276_v10 = vsub.f32 %v1272_v8, %v1274_v6 }
 0xe31   :  { %v1280_v11 = vadd.f32 1e-06, %v1276_v10 }
 0xe33   :  { %3528 = vrsqrt.f32 %v1280_v11 }
 0xe39   :  { %v3527_v13 = vpop.eup %3526 }
 0xe3a   :  { %v1283_v14 = vmul.f32 %v3527_v13, %v1277_v12 }
 0xe3c   :  { %3080 = vmatprep.mubr.msk.f32.mxu0 %vm220_vm2, %v1283_v14 }
 0xe3d   :  { %v3529_v16 = vpop.eup %3528 }
 0xe3e   :  { %v1284_v17 = vmul.f32 %v3529_v16, %v1278_v15 }
 0xe40   :  { %3081 = vmatmul.mubr.msk.f32.vlgmr.msra.gmra.mrb[12].mxu0 %vm220_vm2, %v1284_v17 }
 0xe41   :  { %3304 = vmatpush3.bf16.msra.mxu0 %v3772_v18  ;;  %v77_v18 = vld [vmem:[%s4248_s6 + $0x8] sm:$0xff] }
 0xe42   :  { %3306 = vmatprep.subr.bf16.mxu0 %v3777_v20  ;;  %v4009_v22 = vpack.c.bf16 %v77_v18, %v76_v19 }
 0xe44   :  { %3286 = vmatprep.subr.bf16.mxu1 %v4009_v22 }
 0xe45   :  { %3308 = vmatpush3.bf16.msra.mxu0 %v3777_v20  ;;  %v78_v20 = vld [vmem:[%s4248_s6 + $0x10] sm:$0xff]  ;;  %3288 = vmatpush3.bf16.msra.mxu1 %v4009_v22  ;;  %s3668_s6 = smov [#allocation7]  }
 0xe46   :  { %v4021_v26 = vpack.c.bf16 %v79_v24, %v78_v20 }
 0xe48   :  { %3290 = vmatprep.subr.bf16.mxu1 %v4021_v26 }
 0xe49   :  { %3292 = vmatpush3.bf16.msra.mxu1 %v4021_v26 }
 0xe4a   :  { %3294 = vmatprep.subr.bf16.mxu1 %v4028_v28 }
 0xe4d   :  { %3296 = vmatpush3.bf16.msra.mxu1 %v4028_v28 }
 0xe4e   :  { %3298 = vmatprep.subr.bf16.mxu1 %v4038_v48 }
 0xe51   :  { %3300 = vmatpush3.bf16.msra.mxu1 %v4038_v48 }
 0xf13   :  { %v3082_v32 = vpop.f32.mrb[12].mxu0 }
 0xf14   :  { %v1363_v33 = vadd.f32 %v3082_v32, %v3999_v9  ;;  %v1357_v34 = vpop.f32.mrb[13].mxu0 }
 0xf15   :  { %v1358_v35 = vadd.f32 %v3999_v9, %v1357_v34 }
 0xf16   :  { %v1369_v36 = vmul.f32 0.044715, %v1363_v33  ;;  %v1367_v60 = vmul.f32 0.5, %v1363_v33 }
 0xf17   :  { %v1368_v38 = vmul.f32 0.044715, %v1358_v35  ;;  %v1366_v55 = vmul.f32 0.5, %v1358_v35 }
 0xf18   :  { %v1371_v39 = vmul.f32 %v1369_v36, %v1363_v33 }
 0xf19   :  { %v1370_v42 = vmul.f32 %v1368_v38, %v1358_v35 }
 0xf1a   :  { %v1373_v43 = vmul.f32 %v1371_v39, %v1363_v33 }
 0xf1b   :  { %v1372_v29 = vmul.f32 %v1370_v42, %v1358_v35 }
 0xf1c   :  { %v1375_v49 = vadd.f32 %v1373_v43, %v1363_v33 }
 0xf1d   :  { %v1374_v50 = vadd.f32 %v1372_v29, %v1358_v35 }
 0xf1e   :  { %v1377_v51 = vmul.f32 0.7978846, %v1375_v49 }
 0xf1f   :  { %v1376_v40 = vmul.f32 0.7978846, %v1374_v50 }
 0xf20   :  { %3530 = vtanh.f32 %v1377_v51 }
 0xf21   :  { %3532 = vtanh.f32 %v1376_v40 }
 0xf2a   :  { %v3531_v37 = vpop.eup %3530 }
 0xf2b   :  { %v3533_v53 = vpop.eup %3532  ;;  %v1381_v54 = vadd.f32 1.0, %v3531_v37 }
 0xf2c   :  { %v1380_v56 = vadd.f32 1.0, %v3533_v53 }
 0xf2d   :  { %v1383_v63 = vmul.f32 %v1381_v54, %v1367_v60 }
 0xf2e   :  { %v1382_v62 = vmul.f32 %v1380_v56, %v1366_v55 }
 0xf30   :  { %3099 = vmatprep.mubr.msk.f32.mxu1 %vm1384_vm11, %v1382_v62 }
 0xf31   :  { %3100 = vmatmul.mubr.msk.f32.vlgmr.msra.gmra.mrb[10].mxu1 %vm1384_vm11, %v1383_v63 }
0x1004   :  { %v3101_v0 = vpop.f32.mrb[10].mxu1 }
0x1005   :  { %v1467_v1 = vadd.f32 %v3101_v0, %v3953_v44  ;;  %v1457_v2 = vpop.f32.mrb[11].mxu1 }
0x1006   :  { %v1466_v4 = vadd.f32 %v1457_v2, %v3956_v45 }
0x1007   :  { %v4055_v46 = vadd.f32 %v4048_v3, %v1467_v1 }
0x1008   :  { %v4052_v5 = vadd.f32 %v4048_v3, %v1466_v4 }
0x100a   :  { %3110 = vmatprep.mubr.msk.f32.mxu0 %vm220_vm2, %v4052_v5 }
0x100b   :  { %3111 = vmatmul.mubr.msk.f32.vlgmr.msra.gmra.mrb[14].mxu0 %vm220_vm2, %v4055_v46 }
0x10de   :  { %v3112_v6 = vpop.f32.mrb[14].mxu0 }
0x10df   :  { %v1551_v44 = vadd.f32 %v3112_v6, %v3794_v41  ;;  %v1545_v7 = vpop.f32.mrb[15].mxu0 }
0x10e0   :  { %v1546_v8 = vadd.f32 %v3794_v41, %v1545_v7 }
0x10e1   :  { %v4075_v11 = vmul.f32 0.35355338, %v1551_v44 }
0x10e2   :  { %v4063_v10 = vpack.i.bf16 %v1551_v44, %v1546_v8  ;;  %v4065_v45 = vmul.f32 0.35355338, %v1546_v8 }
0x10e4   :  { %3456 = vrot.lane.b32.xlu1 %v4063_v10, %s3651_s8  ;;  %3451 = vrot.lane.b32.xlu0 %v4063_v10, %s3650_s11 }
0x10e5   :  { %3117 = vmatprep.mubr.msk.f32.mxu0 %vm340_vm3, %v4065_v45 }
0x10e8   :  { %1756 = vrot.lane.b32.xlu1 %v4065_v45, %s3652_s12 }
0x10ec   :  { %1758 = vrot.lane.b32.xlu1 %v4075_v11, %s3652_s12 }
0x1156   :  { %v3457_v41 = vpop.permute.xlu1 %3456  ;;  %v3452_v12 = vpop.permute.xlu0 %3451 }
0x1157   :  { %v3459_v13 = vunpack.i.h.bf16 %v3457_v41  ;;  %v3458_v14 = vunpack.i.l.bf16 %v3457_v41  ;;  %v3454_v15 = vunpack.i.h.bf16 %v3452_v12  ;;  %v3453_v16 = vunpack.i.l.bf16 %v3452_v12 }
0x1159   :  { %v3309_v17 = vpack.c.bf16 %v3454_v15, %v3453_v16  ;;  %v3319_v19 = vpack.c.bf16 %v3459_v13, %v3458_v14 }
0x115a   :  { %v1757_v18 = vpop.permute.xlu1 %1756 }
0x115b   :  { %3311 = vmatprep.subr.msk.bf16.mxu0 %vm3816_vm4, %v3309_v17 }
0x115c   :  { %3314 = vmatpush3.bf16.xpose.msk.msra.mxu0 %vm3816_vm4, %v3309_v17 }
0x115d   :  { %3321 = vmatprep.subr.msk.bf16.mxu0 %vm3816_vm4, %v3319_v19 }
0x115e   :  { %v1759_v20 = vpop.permute.xlu1 %1758 }
0x1163   :  { %3118 = vmatmul.mubr.msk.f32.vlgmr.msra.gmra.mrb[16].mxu0 %vm340_vm3, %v4075_v11 }
0x1164   :  { %3324 = vmatpush3.bf16.xpose.msk.msra.mxu0 %vm3816_vm4, %v3319_v19  ;;  %3131 = vmatprep.mubr.msk.f32.mxu0 %vm340_vm3, %v1757_v18 }
0x116b   :  { %3132 = vmatmul.mubr.msk.f32.vlgmr.msra.gmra.mrb[18].mxu0 %vm340_vm3, %v1759_v20 }
0x1236   :  { %v3119_v24 = vpop.f32.mrb[16].mxu0 }
0x1237   :  { %v1644_v25 = vadd.f32 %v3119_v24, %v3828_v59  ;;  %v1638_v27 = vpop.f32.mrb[17].mxu0 }
0x1238   :  { %v1639_v47 = vadd.f32 %v1638_v27, %v3826_v57 }
0x1239   :  { %v1650_v31 = vsel %vm426_vm9, %v1644_v25, -inf }
0x123a   :  { %1651 = vmax.xlane.f32.xlu1 %v1650_v31  ;;  %v1647_v32 = vsel %vm426_vm9, %v1639_v47, -inf }
0x123b   :  { %1648 = vmax.xlane.f32.xlu0 %v1647_v32 }
0x123e   :  { %v3133_v33 = vpop.f32.mrb[18].mxu0 }
0x123f   :  { %v1838_v34 = vpop.f32.mrb[19].mxu0  ;;  %v1844_v36 = vadd.f32 %v3133_v33, %v3828_v59 }
0x1240   :  { %v1839_v35 = vadd.f32 %v1838_v34, %v3826_v57 }
0x1241   :  { %v1850_v39 = vsel %vm426_vm9, %v1844_v36, -inf }
0x1242   :  { %v1847_v38 = vsel %vm426_vm9, %v1839_v35, -inf }
0x1243   :  { %1848 = vmax.xlane.f32.xlu0 %v1847_v38 }
0x1247   :  { %1851 = vmax.xlane.f32.xlu0 %v1850_v39 }
0x12c7   :  { %v1652_v42 = vpop.xlane.xlu1 %1651 }
0x12c8   :  { %v1654_v43 = vsub.f32 %v1644_v25, %v1652_v42  ;;  %v1649_v29 = vpop.xlane.xlu0 %1648 }
0x12c9   :  { %v1653_v49 = vsub.f32 %v1639_v47, %v1649_v29 }
0x12ca   :  { %v1657_v50 = vmul.f32 1.442695, %v1654_v43 }
0x12cb   :  { %v1655_v51 = vmul.f32 1.442695, %v1653_v49 }
0x12cc   :  { %3534 = vpow2.f32 %v1657_v50 }
0x12cd   :  { %3536 = vpow2.f32 %v1655_v51 }
0x12d0   :  { %v1849_v40 = vpop.xlane.xlu0 %1848 }
0x12d1   :  { %v1853_v37 = vsub.f32 %v1839_v35, %v1849_v40 }
0x12d3   :  { %v1855_v53 = vmul.f32 1.442695, %v1853_v37 }
0x12d4   :  { %v1852_v54 = vpop.xlane.xlu0 %1851 }
0x12d5   :  { %3538 = vpow2.f32 %v1855_v53  ;;  %v1854_v55 = vsub.f32 %v1844_v36, %v1852_v54 }
0x12d6   :  { %v3535_v56 = vpop.eup %3534 }
0x12d7   :  { %v3537_v60 = vpop.eup %3536  ;;  %v1857_v62 = vmul.f32 1.442695, %v1854_v55  ;;  %v1662_v63 = vsel %vm426_vm9, %v3535_v56, 0.0 }
0x12d8   :  { %1663 = vadd.xlane.f32.xlu1 %v1662_v63  ;;  %v1659_v0 = vsel %vm426_vm9, %v3537_v60, 0.0 }
0x12d9   :  { %3540 = vpow2.f32 %v1857_v62  ;;  %1660 = vadd.xlane.f32.xlu0 %v1659_v0 }
0x12df   :  { %v3539_v1 = vpop.eup %3538 }
0x12e0   :  { %v1859_v2 = vsel %vm426_vm9, %v3539_v1, 0.0 }
0x12e1   :  { %1860 = vadd.xlane.f32.xlu0 %v1859_v2 }
0x12e3   :  { %v3541_v4 = vpop.eup %3540 }
0x12e4   :  { %v1862_v6 = vsel %vm426_vm9, %v3541_v4, 0.0 }
0x12e5   :  { %1863 = vadd.xlane.f32.xlu1 %v1862_v6 }
0x12f6   :  { %3466 = vrot.lane.b32.xlu1 %v4063_v10, %s3655_s15 }
0x12f7   :  { %3461 = vrot.lane.b32.xlu0 %v4063_v10, %s3654_s13 }
0x12fa   :  { %3471 = vrot.lane.b32.xlu1 %v4063_v10, %s3657_s17 }
0x12fb   :  { %1958 = vrot.lane.b32.xlu0 %v4075_v11, %s3656_s16 }
0x12fe   :  { %1956 = vrot.lane.b32.xlu1 %v4065_v45, %s3656_s16 }
0x1365   :  { %v1664_v7 = vpop.xlane.xlu1 %1663 }
0x1366   :  { %v1661_v44 = vpop.xlane.xlu0 %1660 }
0x1367   :  { %3542 = vrcp.f32 %v1661_v44 }
0x1368   :  { %3544 = vrcp.f32 %v1664_v7 }
0x136e   :  { %v1861_v8 = vpop.xlane.xlu0 %1860 }
0x136f   :  { %3546 = vrcp.f32 %v1861_v8 }
0x1371   :  { %v3543_v41 = vpop.eup %3542 }
0x1372   :  { %v1864_v12 = vpop.xlane.xlu1 %1863  ;;  %v3462_v13 = vpop.permute.xlu0 %3461  ;;  %v1667_v14 = vmul.f32 %v3543_v41, %v3537_v60 }
0x1373   :  { %3548 = vrcp.f32 %v1864_v12  ;;  %v3464_v15 = vunpack.i.h.bf16 %v3462_v13  ;;  %v3463_v16 = vunpack.i.l.bf16 %v3462_v13  ;;  %v3545_v19 = vpop.eup %3544 }
0x1374   :  { %3124 = vmatprep.mubr.msk.f32.mxu1 %vm426_vm9, %v1667_v14  ;;  %v1668_v27 = vmul.f32 %v3545_v19, %v3535_v56 }
0x1375   :  { %v3315_v17 = vpack.c.bf16 %v3464_v15, %v3463_v16 }
0x1376   :  { %v3467_v18 = vpop.permute.xlu1 %3466  ;;  %v1959_v42 = vpop.permute.xlu0 %1958 }
0x1377   :  { %v3469_v20 = vunpack.i.h.bf16 %v3467_v18  ;;  %v3468_v24 = vunpack.i.l.bf16 %v3467_v18  ;;  %3316 = vmatprep.subr.bf16.mxu1 %v3315_v17 }
0x1378   :  { %3318 = vmatpush3.bf16.msra.mxu1 %v3315_v17 }
0x1379   :  { %v3547_v25 = vpop.eup %3546  ;;  %v3325_v47 = vpack.c.bf16 %v3469_v20, %v3468_v24 }
0x137a   :  { %v3472_v31 = vpop.permute.xlu1 %3471  ;;  %v1867_v32 = vmul.f32 %v3547_v25, %v3539_v1 }
0x137b   :  { %v3474_v33 = vunpack.i.h.bf16 %v3472_v31  ;;  %v3473_v34 = vunpack.i.l.bf16 %v3472_v31  ;;  %3125 = vmatmul.mubr.msk.f32.vlgmr.msra.gmra.mrb[12].mxu1 %vm426_vm9, %v1668_v27  ;;  %3326 = vmatprep.subr.bf16.mxu1 %v3325_v47 }
0x137c   :  { %3328 = vmatpush3.bf16.msra.mxu1 %v3325_v47  ;;  %3138 = vmatprep.mubr.msk.f32.mxu1 %vm426_vm9, %v1867_v32 }
0x137d   :  { %v3549_v35 = vpop.eup %3548  ;;  %v3329_v36 = vpack.c.bf16 %v3474_v33, %v3473_v34 }
0x137e   :  { %v1868_v38 = vmul.f32 %v3549_v35, %v3541_v4  ;;  %v1957_v39 = vpop.permute.xlu1 %1956 }
0x137f   :  { %3331 = vmatprep.subr.msk.bf16.mxu1 %vm3816_vm4, %v3329_v36 }
0x1380   :  { %3139 = vmatmul.mubr.msk.f32.vlgmr.msra.gmra.mrb[14].mxu1 %vm426_vm9, %v1868_v38 }
0x1381   :  { %3145 = vmatprep.mubr.msk.f32.mxu1 %vm340_vm3, %v1957_v39 }
0x1385   :  { %3334 = vmatpush3.bf16.xpose.msk.msra.mxu1 %vm3816_vm4, %v3329_v36 }
0x138c   :  { %3146 = vmatmul.mubr.msk.f32.vlgmr.msra.gmra.mrb[16].mxu1 %vm340_vm3, %v1959_v42 }
0x144e   :  { %v4123_v43 = vpop.f32.mrb[12].mxu1 }
0x144f   :  { %v4125_v29 = vpop.f32.mrb[13].mxu1 }
0x1453   :  { %v4127_v49 = vpop.f32.mrb[14].mxu1 }
0x1454   :  { %v4129_v50 = vpop.f32.mrb[15].mxu1 }
0x145f   :  { %v3147_v51 = vpop.f32.mrb[16].mxu1 }
0x1460   :  { %v2044_v40 = vadd.f32 %v3147_v51, %v3828_v59  ;;  %v2038_v37 = vpop.f32.mrb[17].mxu1 }
0x1461   :  { %v2039_v53 = vadd.f32 %v2038_v37, %v3826_v57 }
0x1462   :  { %v2050_v54 = vsel %vm426_vm9, %v2044_v40, -inf }
0x1463   :  { %2051 = vmax.xlane.f32.xlu0 %v2050_v54  ;;  %v2047_v55 = vsel %vm426_vm9, %v2039_v53, -inf }
0x1464   :  { %2048 = vmax.xlane.f32.xlu1 %v2047_v55 }
0x1475   :  { %3476 = vrot.lane.b32.xlu1 %v4063_v10, %s3658_s1 }
0x1479   :  { %2156 = vrot.lane.b32.xlu1 %v4065_v45, %s3659_s14 }
0x147d   :  { %2158 = vrot.lane.b32.xlu1 %v4075_v11, %s3659_s14 }
0x14f0   :  { %v2052_v56 = vpop.xlane.xlu0 %2051 }
0x14f1   :  { %v2054_v60 = vsub.f32 %v2044_v40, %v2052_v56  ;;  %v2049_v62 = vpop.xlane.xlu1 %2048 }
0x14f2   :  { %v2053_v63 = vsub.f32 %v2039_v53, %v2049_v62 }
0x14f3   :  { %v2057_v0 = vmul.f32 1.442695, %v2054_v60 }
0x14f4   :  { %v2055_v1 = vmul.f32 1.442695, %v2053_v63 }
0x14f5   :  { %3550 = vpow2.f32 %v2057_v0  ;;  %v3477_v2 = vpop.permute.xlu1 %3476 }
0x14f6   :  { %v3479_v4 = vunpack.i.h.bf16 %v3477_v2  ;;  %v3478_v6 = vunpack.i.l.bf16 %v3477_v2  ;;  %3552 = vpow2.f32 %v2055_v1 }
0x14f8   :  { %v3335_v44 = vpack.c.bf16 %v3479_v4, %v3478_v6 }
0x14f9   :  { %v2157_v24 = vpop.permute.xlu1 %2156 }
0x14fa   :  { %3336 = vmatprep.subr.bf16.mxu0 %v3335_v44 }
0x14fb   :  { %3338 = vmatpush3.bf16.msra.mxu0 %v3335_v44 }
0x14fd   :  { %v2159_v25 = vpop.permute.xlu1 %2158 }
0x14ff   :  { %v3551_v7 = vpop.eup %3550 }
0x1500   :  { %v2062_v45 = vsel %vm426_vm9, %v3551_v7, 0.0  ;;  %v3553_v8 = vpop.eup %3552 }
0x1501   :  { %2063 = vadd.xlane.f32.xlu0 %v2062_v45  ;;  %v2059_v11 = vsel %vm426_vm9, %v3553_v8, 0.0 }
0x1505   :  { %2060 = vadd.xlane.f32.xlu0 %v2059_v11 }
0x151b   :  { %3481 = vrot.lane.b32.xlu0 %v4063_v10, %s3660_s18 }
0x158e   :  { %v2064_v41 = vpop.xlane.xlu0 %2063 }
0x158f   :  { %3554 = vrcp.f32 %v2064_v41 }
0x1592   :  { %v2061_v12 = vpop.xlane.xlu0 %2060 }
0x1593   :  { %3556 = vrcp.f32 %v2061_v12 }
0x1596   :  { %v3482_v13 = vpop.permute.xlu0 %3481 }
0x1597   :  { %v3484_v14 = vunpack.i.h.bf16 %v3482_v13  ;;  %v3483_v15 = vunpack.i.l.bf16 %v3482_v13 }
0x1599   :  { %v3339_v16 = vpack.c.bf16 %v3484_v14, %v3483_v15  ;;  %v3555_v17 = vpop.eup %3554 }
0x159a   :  { %v2068_v20 = vmul.f32 %v3555_v17, %v3551_v7 }
0x159b   :  { %3341 = vmatprep.subr.msk.bf16.mxu0 %vm3816_vm4, %v3339_v16 }
0x159d   :  { %v3557_v19 = vpop.eup %3556 }
0x159e   :  { %v2067_v18 = vmul.f32 %v3557_v19, %v3553_v8 }
0x15a0   :  { %3152 = vmatprep.mubr.msk.f32.mxu0 %vm426_vm9, %v2067_v18 }
0x15a1   :  { %3153 = vmatmul.mubr.msk.f32.vlgmr.msra.gmra.mrb[20].mxu0 %vm426_vm9, %v2068_v20 }
0x15a2   :  { %3344 = vmatpush3.bf16.xpose.msk.msra.mxu0 %vm3816_vm4, %v3339_v16  ;;  %3159 = vmatprep.mubr.msk.f32.mxu0 %vm340_vm3, %v2157_v24 }
0x15a3   :  { %3358 = vmatprep.subr.bf16.mxu0 %v3977_v58 }
0x15a9   :  { %3160 = vmatmul.mubr.msk.f32.vlgmr.msra.gmra.mrb[22].mxu0 %vm340_vm3, %v2159_v25 }
0x15aa   :  { %3360 = vmatpush3.bf16.msra.mxu0 %v3977_v58 }
0x15ab   :  { %3362 = vmatprep.subr.bf16.mxu0 %v3982_v61 }
0x15ae   :  { %3364 = vmatpush3.bf16.msra.mxu0 %v3982_v61 }
0x1674   :  { %v3154_v27 = vpop.f32.mrb[20].mxu0 }
0x1675   :  { %v2147_v47 = vpop.f32.mrb[21].mxu0 }
0x167c   :  { %v3161_v31 = vpop.f32.mrb[22].mxu0 }
0x167d   :  { %v2244_v32 = vadd.f32 %v3161_v31, %v3828_v59  ;;  %v2238_v52 = vpop.f32.mrb[23].mxu0 }
0x167e   :  { %v2239_v33 = vadd.f32 %v2238_v52, %v3826_v57 }
0x167f   :  { %v2250_v34 = vsel %vm426_vm9, %v2244_v32, -inf }
0x1680   :  { %2251 = vmax.xlane.f32.xlu0 %v2250_v34  ;;  %v2247_v35 = vsel %vm426_vm9, %v2239_v33, -inf }
0x1681   :  { %2248 = vmax.xlane.f32.xlu1 %v2247_v35 }
0x1692   :  { %3486 = vrot.lane.b32.xlu1 %v4063_v10, %s3661_s19 }
0x1696   :  { %2360 = vrot.lane.b32.xlu1 %v4127_v49, %s3648_s24 }
0x169a   :  { %2366 = vrot.lane.b32.xlu1 %v2147_v47, %s3662_s20 }
0x169e   :  { %2368 = vrot.lane.b32.xlu1 %v3154_v27, %s3662_s20 }
0x170d   :  { %v2252_v59 = vpop.xlane.xlu0 %2251 }
0x170e   :  { %v2254_v58 = vsub.f32 %v2244_v32, %v2252_v59  ;;  %v2249_v61 = vpop.xlane.xlu1 %2248 }
0x170f   :  { %v2253_v57 = vsub.f32 %v2239_v33, %v2249_v61 }
0x1710   :  { %v2257_v36 = vmul.f32 1.442695, %v2254_v58 }
0x1711   :  { %v2255_v38 = vmul.f32 1.442695, %v2253_v57 }
0x1712   :  { %v3487_v39 = vpop.permute.xlu1 %3486 }
0x1713   :  { %3558 = vpow2.f32 %v2255_v38  ;;  %v3489_v42 = vunpack.i.h.bf16 %v3487_v39  ;;  %v3488_v51 = vunpack.i.l.bf16 %v3487_v39 }
0x1714   :  { %3560 = vpow2.f32 %v2257_v36 }
0x1715   :  { %v3345_v40 = vpack.c.bf16 %v3489_v42, %v3488_v51 }
0x1716   :  { %v2361_v1 = vpop.permute.xlu1 %2360 }
0x1717   :  { %3346 = vmatprep.subr.bf16.mxu1 %v3345_v40  ;;  %v2381_v7 = vsel %vm340_vm3, %v4123_v43, %v2361_v1 }
0x1718   :  { %3348 = vmatpush3.bf16.msra.mxu1 %v3345_v40 }
0x1719   :  { %3350 = vmatprep.subr.bf16.mxu1 %v3923_v21 }
0x171a   :  { %v2367_v2 = vpop.permute.xlu1 %2366 }
0x171d   :  { %v3559_v10 = vpop.eup %3558 }
0x171e   :  { %v2259_v49 = vsel %vm426_vm9, %v3559_v10, 0.0  ;;  %v3561_v37 = vpop.eup %3560  ;;  %v2369_v6 = vpop.permute.xlu1 %2368 }
0x171f   :  { %2260 = vadd.xlane.f32.xlu0 %v2259_v49  ;;  %v2262_v53 = vsel %vm426_vm9, %v3561_v37, 0.0  ;;  %v2383_v8 = vsel %vm426_vm9, %v2381_v7, %v2369_v6  ;;  %v2693_v6 = vld [vmem:[#allocation5] sm:$0xff]  ;;  %v3665_v7 = vmov 0.0|0.0  }
0x1720   :  { %3381 = vmatprep.subr.bf16.mxu0 %v3665_v7 }
0x1723   :  { %2263 = vadd.xlane.f32.xlu0 %v2262_v53 }
0x1739   :  { %2358 = vrot.lane.b32.xlu0 %v4129_v50, %s3648_s24  ;;  %s2781_s24 = sshll.u32 %s3668_s6, 4  ;;  %s2782_s24 = int_to_ptr.vmem [resolvable:$true] %s2781_s24 }
0x173a   :  { %s3618_s11 = scalar_lea.vmem %s2782_s24, 32  ;;  %p3623_p3 = scmp.lt.s32.totalorder %s2782_s24, %s2782_s24 }
0x173b   :  { %p3619_p2 = scmp.ne.s32.totalorder %s2782_s24, %s3618_s11  ;;  %p3624_p4 = scmp.lt.s32.totalorder %s3618_s11, %s3618_s11 }
0x173d   :  { %p3625_p5 = por %p3624_p4, %p3623_p3 }
0x173f   :  { %p3626_p6 = pnand %p3625_p5, %p3619_p2 }
0x17ac   :  { %v2261_v54 = vpop.xlane.xlu0 %2260 }
0x17ad   :  { %3562 = vrcp.f32 %v2261_v54 }
0x17b0   :  { %v2264_v55 = vpop.xlane.xlu0 %2263 }
0x17b1   :  { %3564 = vrcp.f32 %v2264_v55 }
0x17b4   :  { %v2359_v4 = vpop.permute.xlu0 %2358 }
0x17b5   :  { %v2380_v44 = vsel %vm340_vm3, %v4125_v29, %v2359_v4 }
0x17b7   :  { %v3563_v56 = vpop.eup %3562 }
0x17b8   :  { %v2267_v60 = vmul.f32 %v3563_v56, %v3559_v10 }
0x17ba   :  { %3166 = vmatprep.mubr.msk.f32.mxu1 %vm426_vm9, %v2267_v60 }
0x17bb   :  { %v3565_v62 = vpop.eup %3564 }
0x17bc   :  { %v2268_v63 = vmul.f32 %v3565_v62, %v3561_v37 }
0x17be   :  { %3167 = vmatmul.mubr.msk.f32.vlgmr.msra.gmra.mrb[18].mxu1 %vm426_vm9, %v2268_v63 }
0x17bf   :  { %3352 = vmatpush3.bf16.msra.mxu1 %v3923_v21 }
0x17c0   :  { %3354 = vmatprep.subr.bf16.mxu1 %v3928_v23 }
0x17c3   :  { %3356 = vmatpush3.bf16.msra.mxu1 %v3928_v23  ;;  %v2382_v23 = vsel %vm426_vm9, %v2380_v44, %v2367_v2  ;;  %v2694_v44 = vld [vmem:[#allocation5 + $0x8] sm:$0xff] }
0x17c4   :  { %3366 = vmatprep.subr.bf16.mxu1 %v4009_v22 }
0x1891   :  { %v3168_v50 = vpop.f32.mrb[18].mxu1 }
0x1892   :  { %2376 = vrot.lane.b32.xlu1 %v3168_v50, %s3663_s27  ;;  %v2347_v0 = vpop.f32.mrb[19].mxu1 }
0x1893   :  { %2374 = vrot.lane.b32.xlu0 %v2347_v0, %s3663_s27 }
0x1904   :  { %v2377_v21 = vpop.permute.xlu1 %2376 }
0x1905   :  { %v2375_v45 = vpop.permute.xlu0 %2374  ;;  %v2385_v41 = vsel %vm1164_vm10, %v2383_v8, %v2377_v21  ;;  %v3382_v21 = vpack.c.bf16 %v2694_v44, %v2693_v6 }
0x1906   :  { %v2384_v11 = vsel %vm1164_vm10, %v2382_v23, %v2375_v45  ;;  %v2695_v23 = vld [vmem:[#allocation5 + $0x10] sm:$0xff]  ;;  %v2696_v45 = vld [vmem:[#allocation5 + $0x18] sm:$0xff] }
0x1907   :  { %3177 = vmatprep.mubr.msk.f32.mxu1 %vm220_vm2, %v2384_v11  ;;  %v3385_v8 = vpack.c.bf16 %v2696_v45, %v2695_v23  ;;  %v3667_v11 = vmov 0.0  }
0x1908   :  { %3178 = vmatmul.mubr.msk.f32.vlgmr.msra.gmra.mrb[20].mxu1 %vm220_vm2, %v2385_v41 }
0x1909   :  { %3368 = vmatpush3.bf16.msra.mxu1 %v4009_v22 }
0x190a   :  { %3370 = vmatprep.subr.bf16.mxu1 %v4021_v26 }
0x190d   :  { %3372 = vmatpush3.bf16.msra.mxu1 %v4021_v26 }
0x190e   :  { %3374 = vmatprep.subr.bf16.mxu1 %v4028_v28 }
0x1911   :  { %3376 = vmatpush3.bf16.msra.mxu1 %v4028_v28 }
0x1912   :  { %3378 = vmatprep.subr.bf16.mxu1 %v4038_v48 }
0x1915   :  { %3380 = vmatpush3.bf16.msra.mxu1 %v4038_v48 }
0x19db   :  { %v3179_v43 = vpop.f32.mrb[20].mxu1 }
0x19dc   :  { %v2468_v29 = vadd.f32 %v3179_v43, %v4055_v46  ;;  %v2458_v12 = vpop.f32.mrb[21].mxu1 }
0x19dd   :  { %v2467_v13 = vadd.f32 %v2458_v12, %v4052_v5 }
0x19de   :  { %v4200_v22 = vadd.f32 %v2468_v29, %v3948_v30 }
0x19df   :  { %v4203_v14 = vadd.f32 %v2467_v13, %v3948_v30 }
0x19e0   :  { %v2474_v26 = vsel %vm220_vm2, %v4200_v22, 0.0  ;;  %v2480_v5 = vmul.f32 %v4200_v22, %v4200_v22 }
0x19e1   :  { %2475 = vadd.xlane.f32.xlu1 %v2474_v26  ;;  %v2471_v28 = vsel %vm220_vm2, %v4203_v14, 0.0  ;;  %v2479_v48 = vmul.f32 %v4203_v14, %v4203_v14 }
0x19e2   :  { %2472 = vadd.xlane.f32.xlu0 %v2471_v28  ;;  %v2484_v30 = vsel %vm220_vm2, %v2480_v5, 0.0 }
0x19e3   :  { %v2481_v46 = vsel %vm220_vm2, %v2479_v48, 0.0 }
0x19e6   :  { %2482 = vadd.xlane.f32.xlu0 %v2481_v46 }
0x19ea   :  { %2485 = vadd.xlane.f32.xlu0 %v2484_v30 }
0x1a00   :  { %2697 = vrot.lane.b32.xlu0 %v3999_v9, %s3664_s28 }
0x1a6e   :  { %v2476_v17 = vpop.xlane.xlu1 %2475 }
0x1a6f   :  { %v2473_v15 = vpop.xlane.xlu0 %2472  ;;  %v2478_v18 = vmul.f32 0.03125, %v2476_v17 }
0x1a70   :  { %v2477_v16 = vmul.f32 0.03125, %v2473_v15 }
0x1a71   :  { %v2490_v47 = vmul.f32 %v2478_v18, %v2478_v18  ;;  %v2494_v58 = vsub.f32 %v4200_v22, %v2478_v18 }
0x1a72   :  { %v2489_v20 = vmul.f32 %v2477_v16, %v2477_v16  ;;  %v2493_v34 = vsub.f32 %v4203_v14, %v2477_v16 }
0x1a73   :  { %v2483_v19 = vpop.xlane.xlu0 %2482 }
0x1a74   :  { %v2487_v24 = vmul.f32 0.03125, %v2483_v19 }
0x1a76   :  { %v2491_v25 = vsub.f32 %v2487_v24, %v2489_v20 }
0x1a77   :  { %v2486_v27 = vpop.xlane.xlu0 %2485 }
0x1a78   :  { %v2495_v31 = vadd.f32 1e-06, %v2491_v25  ;;  %v2488_v32 = vmul.f32 0.03125, %v2486_v27 }
0x1a7a   :  { %3566 = vrsqrt.f32 %v2495_v31  ;;  %v2492_v52 = vsub.f32 %v2488_v32, %v2490_v47 }
0x1a7b   :  { %v2698_v5 = vpop.permute.xlu0 %2697 }
0x1a7c   :  { %v2496_v33 = vadd.f32 1e-06, %v2492_v52 }
0x1a7e   :  { %3568 = vrsqrt.f32 %v2496_v33 }
0x1a84   :  { %v3567_v35 = vpop.eup %3566 }
0x1a85   :  { %v2499_v59 = vmul.f32 %v3567_v35, %v2493_v34 }
0x1a87   :  { %3188 = vmatprep.mubr.msk.f32.mxu0 %vm220_vm2, %v2499_v59 }
0x1a88   :  { %v3569_v61 = vpop.eup %3568 }
0x1a89   :  { %v2500_v57 = vmul.f32 %v3569_v61, %v2494_v58 }
0x1a8b   :  { %3189 = vmatmul.mubr.msk.f32.vlgmr.msra.gmra.mrb[24].mxu0 %vm220_vm2, %v2500_v57 }
0x1a8c   :  { %3383 = vmatpush3.bf16.msra.mxu0 %v3382_v21  ;;  %3218 = vmatprep.mubr.msk.f32.mxu0 %vm3666_vm12, %v3667_v11 }
0x1a8d   :  { %3384 = vmatprep.subr.bf16.mxu0 %v3665_v7 }
0x1a90   :  { %3386 = vmatpush3.bf16.msra.mxu0 %v3385_v8 }
0x1b5e   :  { %v3190_v36 = vpop.f32.mrb[24].mxu0 }
0x1b5f   :  { %v2579_v38 = vadd.f32 %v3190_v36, %v3999_v9  ;;  %v2573_v39 = vpop.f32.mrb[25].mxu0 }
0x1b60   :  { %v2574_v42 = vadd.f32 %v3999_v9, %v2573_v39 }
0x1b61   :  { %v2585_v51 = vmul.f32 0.044715, %v2579_v38  ;;  %v2583_v2 = vmul.f32 0.5, %v2579_v38 }
0x1b62   :  { %v2584_v40 = vmul.f32 0.044715, %v2574_v42  ;;  %v2582_v0 = vmul.f32 0.5, %v2574_v42 }
0x1b63   :  { %v2587_v10 = vmul.f32 %v2585_v51, %v2579_v38 }
0x1b64   :  { %v2586_v49 = vmul.f32 %v2584_v40, %v2574_v42 }
0x1b65   :  { %v2589_v37 = vmul.f32 %v2587_v10, %v2579_v38 }
0x1b66   :  { %v2588_v53 = vmul.f32 %v2586_v49, %v2574_v42 }
0x1b67   :  { %v2591_v54 = vadd.f32 %v2589_v37, %v2579_v38 }
0x1b68   :  { %v2590_v55 = vadd.f32 %v2588_v53, %v2574_v42 }
0x1b69   :  { %v2593_v56 = vmul.f32 0.7978846, %v2591_v54 }
0x1b6a   :  { %v2592_v60 = vmul.f32 0.7978846, %v2590_v55 }
0x1b6b   :  { %3570 = vtanh.f32 %v2593_v56 }
0x1b6c   :  { %3572 = vtanh.f32 %v2592_v60 }
0x1b75   :  { %v3571_v62 = vpop.eup %3570 }
0x1b76   :  { %v3573_v63 = vpop.eup %3572  ;;  %v2597_v50 = vadd.f32 1.0, %v3571_v62 }
0x1b77   :  { %v2596_v1 = vadd.f32 1.0, %v3573_v63 }
0x1b78   :  { %v2599_v9 = vmul.f32 %v2597_v50, %v2583_v2 }
0x1b79   :  { %v2598_v4 = vmul.f32 %v2596_v1, %v2582_v0 }
0x1b7b   :  { %3207 = vmatprep.mubr.msk.f32.mxu1 %vm1384_vm11, %v2598_v4 }
0x1b7c   :  { %3208 = vmatmul.mubr.msk.f32.vlgmr.msra.gmra.mrb[22].mxu1 %vm1384_vm11, %v2599_v9 }
0x1c4f   :  { %v3209_v41 = vpop.f32.mrb[22].mxu1 }
0x1c50   :  { %v2682_v43 = vadd.f32 %v3209_v41, %v4200_v22  ;;  %v2672_v29 = vpop.f32.mrb[23].mxu1 }
0x1c51   :  { %v2681_v12 = vadd.f32 %v2672_v29, %v4203_v14 }
0x1c52   :  { %v2684_v13 = vadd.f32 %v2682_v43, %v4048_v3 }
0x1c53   :  { %v2683_v26 = vadd.f32 %v2681_v12, %v4048_v3 }
0x1c54   :  { %v2689_v28 = vrot.slane %v2684_v13, 6 }
0x1c55   :  { %v2686_v48 = vrot.slane %v2683_v26, 7 }
0x1c57   :  { %v2692_v46 = vsel %vm2691_vm13, %v2686_v48, %v2689_v28 }
0x1c58   :  { %3219 = vmatmul.mubr.msk.f32.vlgmr.msra.gmra.mrb[26].mxu0 %vm220_vm2, %v2692_v46 }
0x1d2b   :  { %v2769_v30 = vpop.f32.mrb[26].mxu0 }
0x1d2c   :  { %v2770_v15 = vadd.f32 %v2769_v30, %v2698_v5  ;;  %v3220_v22 = vpop.f32.mrb[27].mxu0 }
0x1d2e   :  { %2774 = vst.msk [vmem:[#allocation7] sm:$0x3] %vm2773_vm14, %v2770_v15 }
0x1d2f   :  { %3629 = shalt.err (!%p3626_p6)
}
0x1d30   :  { %s3630_s13 = scalar_lea.hbm %s4252_s10, 32 }
0x1d31   :  { %p3631_p7 = scmp.ne.s32.totalorder %s4252_s10, %s3630_s13  ;;  %p3634_p8 = scmp.lt.u32.totalorder %s3630_s13, %s4252_s10 }
0x1d33   :  { %p3636_p9 = pnand %p3634_p8, %p3631_p7 }
0x1d35   :  { %3639 = shalt.err (!%p3636_p9)
}
0x1d36   :  { %2784 = dma.vmem_to_hbm [thread:$0]  %s2782_s24, 32, %s4252_s10, [#allocation4]  }
0x1d37   :  { %3644 = dma.done.wait [#allocation4], 32  }
0x1d38   :  { %3645 = vsyncadd [#allocation4], 4294967264 }
0x1d39   :  { %2788 = vsyncpa [#allocation3], 1 }
0x1d3a   :  { %2789 = vsyncpa [#allocation6], 1 }
0x1d3b   :  { %2790 = vsyncpa [#allocation4], 1 }

</bundles_post_ra>
